<compile_context>
chip_gen: v7x
topology: tpu7x:2x2x1
jax: 0.10.0
libtpu: 0.0.40
codegen_flags: <defaults>
</compile_context>

<pallas_src>
import jax
import jax.numpy as jnp
from jax.experimental import pallas as pl
from jax.experimental.pallas import tpu as pltpu


# ----------------------------------------------------------------------------- kernel

def _bottleneck_kernel(x_ref, w1_ref, w2_ref, w3_ref, b1_ref, b2_ref, b3_ref, o_ref):
    # x_ref : (TR, W, Cin)          compute dtype (bf16 or f32)
    # w1    : (Cin, width)          BN1 scale folded in
    # w2    : (3, width, width)     taps k in {-1, 0, +1}, BN2 scale folded in
    # w3    : (width, planes)       BN3 scale folded in
    # b1/b2/b3 : (1, ch) f32        folded BN biases
    TR, W, Cin = x_ref.shape
    width = w1_ref.shape[1]
    planes = w3_ref.shape[1]
    cdt = x_ref.dtype
    f32 = jnp.float32
    M = TR * W

    # Single 2-D view of the tile -> one large-M MXU matmul per 1x1 conv.
    x2 = x_ref[...].reshape(M, Cin)

    # ---- conv1x1 -> bn1 (bias only) -> relu ---------------------------------
    h1 = jnp.dot(x2, w1_ref[...], preferred_element_type=f32)
    h1 = jnp.maximum(h1 + b1_ref[...], 0.0)                    # (M, width) f32

    # ---- conv(1,3), padding (0,1), stride 1 -> bn2 -> relu ------------------
    # out[w] = in[w-1] @ W0 + in[w] @ W1 + in[w+1] @ W2   (zero padded along W)
    # W-shifted operands via XLU sublane rotations + one boundary mask each.
    # (Rolling the flattened (M, width) view wraps across row groups, but every
    #  w==0 / w==W-1 row is masked to the conv zero-padding anyway.)
    w_of_r = jax.lax.broadcasted_iota(jnp.int32, (TR, W, width), 1).reshape(M, width)
    xm1 = jnp.where(w_of_r == 0, 0.0, pltpu.roll(h1, shift=1, axis=0))       # in[w-1]
    xp1 = jnp.where(w_of_r == W - 1, 0.0, pltpu.roll(h1, shift=M - 1, axis=0))  # in[w+1]

    acc = jnp.dot(xm1.astype(cdt), w2_ref[0], preferred_element_type=f32)
    acc = acc + jnp.dot(h1.astype(cdt), w2_ref[1], preferred_element_type=f32)
    acc = acc + jnp.dot(xp1.astype(cdt), w2_ref[2], preferred_element_type=f32)
    h2 = jnp.maximum(acc + b2_ref[...], 0.0)                   # (M, width) f32

    # ---- conv1x1 -> bn3 -> +identity -> relu --------------------------------
    h3 = jnp.dot(h2.astype(cdt), w3_ref[...], preferred_element_type=f32)
    out = jnp.maximum(h3 + b3_ref[...] + x2.astype(f32), 0.0)
    o_ref[...] = out.reshape(TR, W, planes).astype(o_ref.dtype)


# ----------------------------------------------------------------------------- tiling helpers

def _vmem_budget_bytes():
    """Half of physical VMEM, with a generation-aware fallback when get_tpu_info
    is unavailable (128 MiB parts: v4/v5/v6; 64 MiB: v7x)."""
    cap = None
    try:
        info = pltpu.get_tpu_info()
        cap = getattr(info, "vmem_capacity_bytes", None)
    except Exception:
        cap = None
    if not cap:
        try:
            kind = jax.devices()[0].device_kind.lower()
        except Exception:
            kind = ""
        cap = (64 if "7" in kind else 128) * 1024 * 1024
    return int(cap) // 2


def _pick_row_tile(rows, w, cin, width, planes, cd_bytes, od_bytes, vmem_budget):
    """Largest divisor of `rows` whose block fits the VMEM budget, targets large
    (~budget/8) input blocks, keeps >= 2 grid steps, and prefers an even grid
    length (v7x: 2 TensorCores share the parallel axis)."""
    weights_bytes = 2 * ((cin * width + 3 * width * width + width * planes) * cd_bytes
                         + 4 * (2 * width + planes))
    per_row = w * (2 * cin * cd_bytes                  # double-buffered input tile
                   + 2 * planes * od_bytes             # double-buffered output tile
                   + 4 * (2 * width + 2 * planes)      # f32 intermediates (h1, acc, out, residual)
                   + 2 * 4 * width)                    # bf16 temporaries (shifted operands, casts)
    avail = max(vmem_budget - weights_bytes - (2 << 20), per_row)
    blk_cap = max(vmem_budget // 8, 1 << 20)           # 4-8 MiB (v5e/v6e), 2-4 MiB (v7x)
    cap = max(1, min(rows, avail // per_row, blk_cap // max(w * cin * cd_bytes, 1)))
    if rows >= 2:
        cap = min(cap, rows // 2)                      # >= 2 grid steps (megacore / pipeline)
    cap = max(1, int(cap))

    best, best_even = 1, None
    for t in range(cap, 0, -1):
        if rows % t == 0:
            if best == 1:
                best = t
            if (rows // t) % 2 == 0:
                best_even = t
                break
    if best_even is not None and best_even * 2 >= best:
        return best_even
    return best


# ----------------------------------------------------------------------------- wrappers

def bottleneck_pallas_nhwc(x_nhwc, params, *, row_tile=None, out_dtype=None,
                           vmem_budget=None):
    """Channels-last entry point (preferred: no layout round trips).
    x_nhwc: (N, H, W, C). Returns (N, H, W, planes) in the compute dtype by
    default (bf16) -- pass out_dtype=jnp.float32 for the final block."""
    w1, w2, w3, b1, b2, b3 = params
    N, H, W, C = x_nhwc.shape
    cin, width = w1.shape
    planes = w3.shape[1]
    assert C == cin, "input channels must match conv1 weight"
    # TODO(synk): downsample / expansion mapping not implemented; identity add
    #             requires inplanes == planes.
    assert planes == C, "identity add requires inplanes == planes (downsample=None)"

    cd = w1.dtype
    od = jnp.dtype(out_dtype) if out_dtype is not None else jnp.dtype(cd)
    cd_bytes = jnp.dtype(cd).itemsize
    od_bytes = od.itemsize

    x = x_nhwc.reshape(N * H, W, C).astype(cd)
    rows = N * H

    budget = int(vmem_budget) if vmem_budget else _vmem_budget_bytes()
    if row_tile is None:
        row_tile = _pick_row_tile(rows, W, C, width, planes, cd_bytes, od_bytes, budget)
    assert rows % row_tile == 0, "row_tile must divide N*H"
    grid = (rows // row_tile,)

    flops = 2 * rows * W * (C * width + 3 * width * width + width * planes)
    bytes_accessed = (rows * W * C * cd_bytes
                      + rows * W * planes * od_bytes
                      + (C * width + 3 * width * width + width * planes) * cd_bytes
                      + 4 * (2 * width + planes))

    def _full(a):
        nd = a.ndim
        return pl.BlockSpec(a.shape, lambda r: (0,) * nd)

    out = pl.pallas_call(
        _bottleneck_kernel,
        out_shape=jax.ShapeDtypeStruct((rows, W, planes), od),
        grid_spec=pltpu.PrefetchScalarGridSpec(
            num_scalar_prefetch=0,
            grid=grid,
            in_specs=[
                pl.BlockSpec((row_tile, W, C), lambda r: (r, 0, 0)),   # x tile
                _full(w1), _full(w2), _full(w3),
                _full(b1), _full(b2), _full(b3),
            ],
            out_specs=pl.BlockSpec((row_tile, W, planes), lambda r: (r, 0, 0)),
        ),
        compiler_params=pltpu.CompilerParams(
            dimension_semantics=("parallel",),
            vmem_limit_bytes=int(budget),
        ),
        cost_estimate=pl.CostEstimate(flops=int(flops), transcendentals=0,
                                      bytes_accessed=int(bytes_accessed)),
    )(x, w1, w2, w3, b1, b2, b3)

    return out.reshape(N, H, W, planes)


def bottleneck_pallas(x_nchw, params, *, row_tile=None, out_dtype=None):
    """NCHW interface matching the PyTorch module. NOTE: the NCHW<->NHWC
    transposes each cost an HBM round trip; in a real network keep activations
    channels-last and call bottleneck_pallas_nhwc directly."""
    x = jnp.transpose(x_nchw, (0, 2, 3, 1))
    out = bottleneck_pallas_nhwc(x, params, row_tile=row_tile, out_dtype=out_dtype)
    return jnp.transpose(out, (0, 3, 1, 2))


# ----------------------------------------------------------------------------- params

def make_raw_params(key, inplanes, planes, width):
    """PyTorch-layout conv weights (Cout, Cin, kh, kw) + BN stats."""
    ks = jax.random.split(key, 6)
    w1 = jax.random.normal(ks[0], (width, inplanes, 1, 1), jnp.float32) * 0.1
    w2 = jax.random.normal(ks[1], (width, width, 1, 3), jnp.float32) * 0.1
    w3 = jax.random.normal(ks[2], (planes, width, 1, 1), jnp.float32) * 0.1

    def bn(k, ch):
        k1, k2, k3, k4 = jax.random.split(k, 4)
        return dict(gamma=jax.random.uniform(k1, (ch,), jnp.float32, 0.5, 1.5),
                    beta=jax.random.normal(k2, (ch,), jnp.float32) * 0.1,
                    mean=jax.random.normal(k3, (ch,), jnp.float32) * 0.1,
                    var=jax.random.uniform(k4, (ch,), jnp.float32, 0.5, 1.5))

    return dict(w1=w1, w2=w2, w3=w3,
                bn1=bn(ks[3], width), bn2=bn(ks[4], width), bn3=bn(ks[5], planes))


def pack_params(raw, compute_dtype=jnp.bfloat16, eps=1e-5):
    """Fold eval-mode BN into the conv weights; stack the (1,3) conv taps as a
    (3, width, width) array; cast weights to the compute dtype."""
    def fold(bn):
        s = bn["gamma"] / jnp.sqrt(bn["var"] + eps)
        return s, bn["beta"] - bn["mean"] * s

    s1, b1 = fold(raw["bn1"])
    s2, b2 = fold(raw["bn2"])
    s3, b3 = fold(raw["bn3"])

    w1 = (raw["w1"][:, :, 0, 0].T * s1[None, :]).astype(compute_dtype)        # (Cin, width)
    w2 = jnp.stack([(raw["w2"][:, :, 0, k].T * s2[None, :]).astype(compute_dtype)
                    for k in range(3)], axis=0)                               # (3, width, width)
    w3 = (raw["w3"][:, :, 0, 0].T * s3[None, :]).astype(compute_dtype)        # (width, planes)

    row = lambda v: v.reshape(1, -1).astype(jnp.float32)
    return (w1, w2, w3, row(b1), row(b2), row(b3))


# ----------------------------------------------------------------------------- reference

def bottleneck_ref(x_nchw, packed, out_dtype=None):
    """Pure-JAX reference mirroring the kernel's exact cast points (bf16 matmul
    operands, f32 accumulation), NCHW in/out."""
    w1, w2, w3, b1, b2, b3 = packed
    cd = w1.dtype
    od = out_dtype or cd
    f32 = jnp.float32

    x = jnp.transpose(x_nchw, (0, 2, 3, 1)).astype(cd)                        # NHWC
    h1 = jnp.maximum(
        jnp.einsum('nhwc,cd->nhwd', x, w1, preferred_element_type=f32) + b1[0], 0.0)
    h1c = h1.astype(cd)
    zero = jnp.zeros_like(h1c[:, :, :1, :])
    xm1 = jnp.concatenate([zero, h1c[:, :, :-1, :]], axis=2)
    xp1 = jnp.concatenate([h1c[:, :, 1:, :], zero], axis=2)
    acc = (jnp.einsum('nhwc,cd->nhwd', xm1, w2[0], preferred_element_type=f32)
           + jnp.einsum('nhwc,cd->nhwd', h1c, w2[1], preferred_element_type=f32)
           + jnp.einsum('nhwc,cd->nhwd', xp1, w2[2], preferred_element_type=f32))
    h2 = jnp.maximum(acc + b2[0], 0.0)
    h3 = jnp.einsum('nhwc,cd->nhwd', h2.astype(cd), w3, preferred_element_type=f32)
    out = jnp.maximum(h3 + b3[0] + x.astype(f32), 0.0)
    return jnp.transpose(out.astype(od), (0, 3, 1, 2))


# ----------------------------------------------------------------------------- demo

if __name__ == "__main__":
    key = jax.random.PRNGKey(0)
    kx, kp = jax.random.split(key)

    # Lane-dense channel counts (C = planes = 128 fill the 128-lane vregs and
    # give unmasked output stores); width = 64 is the module's default.
    N, C, H, W = 2, 128, 8, 32
    width = 64

    x = jax.random.normal(kx, (N, C, H, W), jnp.float32)
    raw = make_raw_params(kp, inplanes=C, planes=C, width=width)
    packed = pack_params(raw, compute_dtype=jnp.bfloat16)

    out = bottleneck_pallas(x, packed)            # bf16 output by default
    out = jax.block_until_ready(out)
    assert out.shape == (N, C, H, W)

    ref = bottleneck_ref(x, packed)
    o32 = out.astype(jnp.float32)
    r32 = ref.astype(jnp.float32)
    max_err = float(jnp.max(jnp.abs(o32 - r32)))
    assert jnp.allclose(o32, r32, atol=3e-2, rtol=3e-2), \
        f"mismatch vs reference (max abs err {max_err})"

    print("KERNEL_OK")
</pallas_src>

<mosaic_0001>
module attributes {stable_mosaic.version = 11 : i64} {
  func.func @_bottleneck_kernel(%arg0: i32, %arg1: memref<8x32x128xbf16, #tpu.memory_space<vmem>>, %arg2: memref<128x64xbf16, #tpu.memory_space<vmem>>, %arg3: memref<3x64x64xbf16, #tpu.memory_space<vmem>>, %arg4: memref<64x128xbf16, #tpu.memory_space<vmem>>, %arg5: memref<1x64xf32, #tpu.memory_space<vmem>>, %arg6: memref<1x64xf32, #tpu.memory_space<vmem>>, %arg7: memref<1x128xf32, #tpu.memory_space<vmem>>, %arg8: memref<8x32x128xbf16, #tpu.memory_space<vmem>>) attributes {dimension_semantics = [#tpu.dimension_semantics<parallel>], iteration_bounds = array<i64: 2>, scalar_prefetch = 0 : i64, scratch_operands = 0 : i64, tpu.core_type = #tpu.core_type<tc>, window_params = [{transform_indices = @transform_0, window_bounds = array<i64: 8, 32, 128>}, {pipeline_mode = #tpu.pipeline_mode<synchronous>, transform_indices = @transform_1, window_bounds = array<i64: 128, 64>}, {pipeline_mode = #tpu.pipeline_mode<synchronous>, transform_indices = @transform_2, window_bounds = array<i64: 3, 64, 64>}, {pipeline_mode = #tpu.pipeline_mode<synchronous>, transform_indices = @transform_3, window_bounds = array<i64: 64, 128>}, {pipeline_mode = #tpu.pipeline_mode<synchronous>, transform_indices = @transform_4, window_bounds = array<i64: 1, 64>}, {pipeline_mode = #tpu.pipeline_mode<synchronous>, transform_indices = @transform_5, window_bounds = array<i64: 1, 64>}, {pipeline_mode = #tpu.pipeline_mode<synchronous>, transform_indices = @transform_6, window_bounds = array<i64: 1, 128>}, {transform_indices = @transform_7, window_bounds = array<i64: 8, 32, 128>}]} {
    %c0 = arith.constant 0 : index
    %c0_0 = arith.constant 0 : index
    %c0_1 = arith.constant 0 : index
    %0 = vector.load %arg1[%c0, %c0_0, %c0_1] : memref<8x32x128xbf16, #tpu.memory_space<vmem>>, vector<8x32x128xbf16>
    %1 = vector.shape_cast %0 : vector<8x32x128xbf16> to vector<256x128xbf16>
    %c0_2 = arith.constant 0 : index
    %c0_3 = arith.constant 0 : index
    %2 = vector.load %arg2[%c0_2, %c0_3] : memref<128x64xbf16, #tpu.memory_space<vmem>>, vector<128x64xbf16>
    %cst = arith.constant dense<0.000000e+00> : vector<256x64xf32>
    %3 = tpu.matmul %1, %2, %cst {dimension_numbers = #tpu.dot_dimension_numbers<[1], [0], [0], [1], [0, 0, 1, 1], [], []>} : vector<256x128xbf16>, vector<128x64xbf16>, vector<256x64xf32> -> vector<256x64xf32>
    %c0_4 = arith.constant 0 : index
    %c0_5 = arith.constant 0 : index
    %4 = vector.load %arg5[%c0_4, %c0_5] : memref<1x64xf32, #tpu.memory_space<vmem>>, vector<1x64xf32>
    %5 = vector.broadcast %4 : vector<1x64xf32> to vector<256x64xf32>
    %6 = arith.addf %3, %5 : vector<256x64xf32>
    %cst_6 = arith.constant 0.000000e+00 : f32
    %7 = vector.broadcast %cst_6 : f32 to vector<256x64xf32>
    %8 = arith.maximumf %6, %7 : vector<256x64xf32>
    %9 = tpu.iota {dimensions = array<i32: 1>} : vector<8x32x64xi32>
    %10 = vector.shape_cast %9 : vector<8x32x64xi32> to vector<256x64xi32>
    %c0_i32 = arith.constant 0 : i32
    %11 = vector.broadcast %c0_i32 : i32 to vector<256x64xi32>
    %12 = arith.cmpi eq, %10, %11 : vector<256x64xi32>
    %c1_i32 = arith.constant 1 : i32
    %13 = tpu.dynamic_rotate %8 by %c1_i32 dim 0 : vector<256x64xf32>, i32 -> vector<256x64xf32>
    %cst_7 = arith.constant 0.000000e+00 : f32
    %14 = vector.broadcast %cst_7 : f32 to vector<256x64xf32>
    %15 = arith.select %12, %14, %13 : vector<256x64xi1>, vector<256x64xf32>
    %c31_i32 = arith.constant 31 : i32
    %16 = vector.broadcast %c31_i32 : i32 to vector<256x64xi32>
    %17 = arith.cmpi eq, %10, %16 : vector<256x64xi32>
    %c255_i32 = arith.constant 255 : i32
    %18 = tpu.dynamic_rotate %8 by %c255_i32 dim 0 : vector<256x64xf32>, i32 -> vector<256x64xf32>
    %cst_8 = arith.constant 0.000000e+00 : f32
    %19 = vector.broadcast %cst_8 : f32 to vector<256x64xf32>
    %20 = arith.select %17, %19, %18 : vector<256x64xi1>, vector<256x64xf32>
    %21 = arith.truncf %15 : vector<256x64xf32> to vector<256x64xbf16>
    %c0_9 = arith.constant 0 : index
    %c0_10 = arith.constant 0 : index
    %c0_11 = arith.constant 0 : index
    %22 = vector.load %arg3[%c0_9, %c0_10, %c0_11] : memref<3x64x64xbf16, #tpu.memory_space<vmem>>, vector<1x64x64xbf16>
    %23 = vector.shape_cast %22 : vector<1x64x64xbf16> to vector<64x64xbf16>
    %cst_12 = arith.constant dense<0.000000e+00> : vector<256x64xf32>
    %24 = tpu.matmul %21, %23, %cst_12 {dimension_numbers = #tpu.dot_dimension_numbers<[1], [0], [0], [1], [0, 0, 1, 1], [], []>} : vector<256x64xbf16>, vector<64x64xbf16>, vector<256x64xf32> -> vector<256x64xf32>
    %25 = arith.truncf %8 : vector<256x64xf32> to vector<256x64xbf16>
    %c1 = arith.constant 1 : index
    %c0_13 = arith.constant 0 : index
    %c0_14 = arith.constant 0 : index
    %26 = vector.load %arg3[%c1, %c0_13, %c0_14] : memref<3x64x64xbf16, #tpu.memory_space<vmem>>, vector<1x64x64xbf16>
    %27 = vector.shape_cast %26 : vector<1x64x64xbf16> to vector<64x64xbf16>
    %cst_15 = arith.constant dense<0.000000e+00> : vector<256x64xf32>
    %28 = tpu.matmul %25, %27, %cst_15 {dimension_numbers = #tpu.dot_dimension_numbers<[1], [0], [0], [1], [0, 0, 1, 1], [], []>} : vector<256x64xbf16>, vector<64x64xbf16>, vector<256x64xf32> -> vector<256x64xf32>
    %29 = arith.addf %24, %28 : vector<256x64xf32>
    %30 = arith.truncf %20 : vector<256x64xf32> to vector<256x64xbf16>
    %c2 = arith.constant 2 : index
    %c0_16 = arith.constant 0 : index
    %c0_17 = arith.constant 0 : index
    %31 = vector.load %arg3[%c2, %c0_16, %c0_17] : memref<3x64x64xbf16, #tpu.memory_space<vmem>>, vector<1x64x64xbf16>
    %32 = vector.shape_cast %31 : vector<1x64x64xbf16> to vector<64x64xbf16>
    %cst_18 = arith.constant dense<0.000000e+00> : vector<256x64xf32>
    %33 = tpu.matmul %30, %32, %cst_18 {dimension_numbers = #tpu.dot_dimension_numbers<[1], [0], [0], [1], [0, 0, 1, 1], [], []>} : vector<256x64xbf16>, vector<64x64xbf16>, vector<256x64xf32> -> vector<256x64xf32>
    %34 = arith.addf %29, %33 : vector<256x64xf32>
    %c0_19 = arith.constant 0 : index
    %c0_20 = arith.constant 0 : index
    %35 = vector.load %arg6[%c0_19, %c0_20] : memref<1x64xf32, #tpu.memory_space<vmem>>, vector<1x64xf32>
    %36 = vector.broadcast %35 : vector<1x64xf32> to vector<256x64xf32>
    %37 = arith.addf %34, %36 : vector<256x64xf32>
    %cst_21 = arith.constant 0.000000e+00 : f32
    %38 = vector.broadcast %cst_21 : f32 to vector<256x64xf32>
    %39 = arith.maximumf %37, %38 : vector<256x64xf32>
    %40 = arith.truncf %39 : vector<256x64xf32> to vector<256x64xbf16>
    %c0_22 = arith.constant 0 : index
    %c0_23 = arith.constant 0 : index
    %41 = vector.load %arg4[%c0_22, %c0_23] : memref<64x128xbf16, #tpu.memory_space<vmem>>, vector<64x128xbf16>
    %cst_24 = arith.constant dense<0.000000e+00> : vector<256x128xf32>
    %42 = tpu.matmul %40, %41, %cst_24 {dimension_numbers = #tpu.dot_dimension_numbers<[1], [0], [0], [1], [0, 0, 1, 1], [], []>} : vector<256x64xbf16>, vector<64x128xbf16>, vector<256x128xf32> -> vector<256x128xf32>
    %c0_25 = arith.constant 0 : index
    %c0_26 = arith.constant 0 : index
    %43 = vector.load %arg7[%c0_25, %c0_26] : memref<1x128xf32, #tpu.memory_space<vmem>>, vector<1x128xf32>
    %44 = vector.broadcast %43 : vector<1x128xf32> to vector<256x128xf32>
    %45 = arith.addf %42, %44 : vector<256x128xf32>
    %46 = arith.extf %1 : vector<256x128xbf16> to vector<256x128xf32>
    %47 = arith.addf %45, %46 : vector<256x128xf32>
    %cst_27 = arith.constant 0.000000e+00 : f32
    %48 = vector.broadcast %cst_27 : f32 to vector<256x128xf32>
    %49 = arith.maximumf %47, %48 : vector<256x128xf32>
    %50 = vector.shape_cast %49 : vector<256x128xf32> to vector<8x32x128xf32>
    %51 = arith.truncf %50 : vector<8x32x128xf32> to vector<8x32x128xbf16>
    %c0_28 = arith.constant 0 : index
    %c0_29 = arith.constant 0 : index
    %c0_30 = arith.constant 0 : index
    %52 = vector.load %arg8[%c0_28, %c0_29, %c0_30] : memref<8x32x128xbf16, #tpu.memory_space<vmem>>, vector<8x32x128xbf16>
    tpu.vector_store %arg8[%c0_28, %c0_29, %c0_30], %51 {strides = array<i32>} : memref<8x32x128xbf16, #tpu.memory_space<vmem>>, vector<8x32x128xbf16>,
    return
  }
  func.func @transform_0(%arg0: i32) -> (i32, i32, i32) {
    %c0_i32 = arith.constant 0 : i32
    %c0_i32_0 = arith.constant 0 : i32
    %c0_i32_1 = arith.constant 0 : i32
    return %arg0, %c0_i32, %c0_i32_0 : i32, i32, i32
  }
  func.func @transform_1(%arg0: i32) -> (i32, i32) {
    %c0_i32 = arith.constant 0 : i32
    %c0_i32_0 = arith.constant 0 : i32
    %c0_i32_1 = arith.constant 0 : i32
    return %c0_i32, %c0_i32_0 : i32, i32
  }
  func.func @transform_2(%arg0: i32) -> (i32, i32, i32) {
    %c0_i32 = arith.constant 0 : i32
    %c0_i32_0 = arith.constant 0 : i32
    %c0_i32_1 = arith.constant 0 : i32
    %c0_i32_2 = arith.constant 0 : i32
    return %c0_i32, %c0_i32_0, %c0_i32_1 : i32, i32, i32
  }
  func.func @transform_3(%arg0: i32) -> (i32, i32) {
    %c0_i32 = arith.constant 0 : i32
    %c0_i32_0 = arith.constant 0 : i32
    %c0_i32_1 = arith.constant 0 : i32
    return %c0_i32, %c0_i32_0 : i32, i32
  }
  func.func @transform_4(%arg0: i32) -> (i32, i32) {
    %c0_i32 = arith.constant 0 : i32
    %c0_i32_0 = arith.constant 0 : i32
    %c0_i32_1 = arith.constant 0 : i32
    return %c0_i32, %c0_i32_0 : i32, i32
  }
  func.func @transform_5(%arg0: i32) -> (i32, i32) {
    %c0_i32 = arith.constant 0 : i32
    %c0_i32_0 = arith.constant 0 : i32
    %c0_i32_1 = arith.constant 0 : i32
    return %c0_i32, %c0_i32_0 : i32, i32
  }
  func.func @transform_6(%arg0: i32) -> (i32, i32) {
    %c0_i32 = arith.constant 0 : i32
    %c0_i32_0 = arith.constant 0 : i32
    %c0_i32_1 = arith.constant 0 : i32
    return %c0_i32, %c0_i32_0 : i32, i32
  }
  func.func @transform_7(%arg0: i32) -> (i32, i32, i32) {
    %c0_i32 = arith.constant 0 : i32
    %c0_i32_0 = arith.constant 0 : i32
    %c0_i32_1 = arith.constant 0 : i32
    return %arg0, %c0_i32, %c0_i32_0 : i32, i32, i32
  }
}

</mosaic_0001>

<bundles_post_ra>
// kernel: tpu_custom_call.1
= control target key start
LH: loop header
LB: loop body
LE: loop exit
PB: predicated region body
PF: predicated region fallthrough
CT: control target
= control target key end

     0   :  { %12 = vsyncpa [#allocation3], 0  ;;  %s4739_s0 = inlined_call_operand.hbm [shape: bf16[16,32,128], index: 0, kind: input, shape index: {}]   ;;  %s4740_s1 = inlined_call_operand.hbm [shape: bf16[128,64], index: 1, kind: input, shape index: {}]   ;;  %s4741_s2 = inlined_call_operand.hbm [shape: bf16[3,64,64], index: 2, kind: input, shape index: {}]   ;;  %s4742_s3 = inlined_call_operand.hbm [shape: bf16[64,128], index: 3, kind: input, shape index: {}]   ;;  %s4743_s4 = inlined_call_operand.hbm [shape: f32[1,64], index: 4, kind: input, shape index: {}]   ;;  %s4744_s5 = inlined_call_operand.hbm [shape: f32[1,64], index: 5, kind: input, shape index: {}]   ;;  %s4745_s6 = inlined_call_operand.hbm [shape: f32[1,128], index: 6, kind: input, shape index: {}]   ;;  %s4746_s7 = inlined_call_operand.hbm [shape: bf16[16,32,128], index: 7, kind: output, shape index: {}]  }
   0x1   :  { %14 = vsyncpa [#allocation3 + $0x1], 0 }
   0x2   :  { %15 = vsyncpa [#allocation6], 0 }
   0x3   :  { %16 = vsyncpa [#allocation9], 0 }
   0x4   :  { %17 = vsyncpa [#allocation12], 0 }
   0x5   :  { %18 = vsyncpa [#allocation4], 0 }
   0x6   :  { %20 = vsyncpa [#allocation4 + $0x1], 0  ;;  %s3718_s24 = smov 0   ;;  %s3720_s25 = smov 0  }
   0x7   :  { %s3722_s26 = smov 0   ;;  %s3724_s27 = smov 0  }
   0x8 LB: > { %s3666_s28 = smov [#allocation5]   ;;  %s3739_s30 = sadd.s32 4294967295, %s3664_s27   ;;  %s3664_s27 = sphi %s3724_s27, %s4849_s27   ;;  %s3660_s26 = sphi %s3722_s26, %s4848_s26   ;;  %s3656_s25 = sphi %s3720_s25, %s4847_s25   ;;  %s3652_s24 = sphi %s3718_s24, %s4846_s24  }
   0x9   : > { %s221_s29 = sshll.u32 %s3666_s28, 4  ;;  %p2524_p0 = scmp.ge.s32.totalorder %s3664_s27, 1  ;;  %s3744_s29 = int_to_ptr.vmem [resolvable:$true] %s221_s29 }
   0xa   : > { %p4747_p1 = scmp.eq.s32.totalorder %s3739_s30, 0  ;;  %p209_p2 = scmp.lt.s32.totalorder %s3664_s27, 3 }
   0xb   : > { %s3667_s9 = smov [#allocation8]   ;;  %s3668_s12 = smov [#allocation11]  }
   0xc   : > { %p3746_p3 = pnand %p2524_p0, %p209_p2  ;;  %s247_s10 = sshll.u32 %s3667_s9, 4  ;;  %s3759_s10 = int_to_ptr.vmem [resolvable:$true] %s247_s10 }
   0xd   : > { %s272_s13 = sshll.u32 %s3668_s12, 4  ;;  %s3388_s16 = scalar_lea.hbm %s4740_s1, 1024  ;;  %s3761_s13 = int_to_ptr.vmem [resolvable:$true] %s272_s13 }
   0xe   : > { %s4768_s8 = scalar_select %p3746_p3, 1, 0 }
   0xf   : > { %p3233_p5 = pneg %p3746_p3  ;;  %p3389_p7 = scmp.ne.s32.totalorder %s4740_s1, %s3388_s16 }
  0x10   : > { %p3395_p11 = scmp.lt.u32.totalorder %s3388_s16, %s4740_s1 }
  0x11   : > { %p3755_p6 = pnand %p3233_p5, %p4747_p1 }
  0x13   : > { %p3771_p8 = pneg %p3755_p6 }
  0x15   : > { %p3391_p9 = pnand %p3771_p8, %p3389_p7 }
  0x17   : > { %p3392_p10 = pneg %p3391_p9 }
  0x19   : > { %p3397_p12 = pnand %p3395_p11, %p3392_p10 }
  0x1b   : > { %3400 = shalt.err (!%p3397_p12)
}
  0x1c   : > { %s3401_s22 = scalar_lea.vmem %s3744_s29, 1024  ;;  %p3409_p5 = scmp.lt.s32.totalorder %s3744_s29, %s3744_s29 }
  0x1d   : > { %p3402_p13 = scmp.ne.s32.totalorder %s3744_s29, %s3401_s22  ;;  %p3410_p4 = scmp.lt.s32.totalorder %s3401_s22, %s3401_s22 }
  0x1f   : > { %p3404_p0 = pnand %p3402_p13, %p3771_p8  ;;  %p3411_p7 = por %p3410_p4, %p3409_p5 }
  0x21   : > { %p3405_p2 = pneg %p3404_p0 }
  0x23   : > { %p3412_p9 = pnand %p3411_p7, %p3405_p2 }
  0x25   : > { %3415 = shalt.err (!%p3412_p9)
}
  0x26   : > { %s4749_s23 = smov 64   ;;  %s3670_s28 = smov 4  }
  0x27   : > { %3236 = dma.hbm_to_vmem [thread:$0]  (!%p3755_p6), %s4740_s1, 1024, %s3744_s29, [#allocation6], %s4749_s23, %s4749_s23, %s3670_s28  }
  0x28   : > { %s3416_s16 = scalar_lea.hbm %s4742_s3, 512 }
  0x29   : > { %p3417_p4 = scmp.ne.s32.totalorder %s4742_s3, %s3416_s16  ;;  %p3423_p12 = scmp.lt.u32.totalorder %s3416_s16, %s4742_s3 }
  0x2b   : > { %p3419_p10 = pnand %p3417_p4, %p3771_p8 }
  0x2d   : > { %p3420_p11 = pneg %p3419_p10 }
  0x2f   : > { %p3425_p13 = pnand %p3423_p12, %p3420_p11 }
  0x31   : > { %3428 = shalt.err (!%p3425_p13)
}
  0x32   : > { %s3429_s29 = scalar_lea.vmem %s3759_s10, 512  ;;  %p3437_p7 = scmp.lt.s32.totalorder %s3759_s10, %s3759_s10 }
  0x33   : > { %p3430_p0 = scmp.ne.s32.totalorder %s3759_s10, %s3429_s29  ;;  %p3438_p9 = scmp.lt.s32.totalorder %s3429_s29, %s3429_s29 }
  0x35   : > { %p3432_p2 = pnand %p3430_p0, %p3771_p8  ;;  %p3439_p4 = por %p3438_p9, %p3437_p7 }
  0x37   : > { %p3433_p5 = pneg %p3432_p2 }
  0x39   : > { %p3440_p10 = pnand %p3439_p4, %p3433_p5 }
  0x3b   : > { %3443 = shalt.err (!%p3440_p10)
}
  0x3c   : > { %3242 = dma.hbm_to_vmem [thread:$0]  (!%p3755_p6), %s4742_s3, 512, %s3759_s10, [#allocation9], %s4749_s23, %s4749_s23, %s3670_s28  }
  0x3d   : > { %s3444_s15 = scalar_lea.hbm %s4744_s5, 16 }
  0x3e   : > { %p3445_p11 = scmp.ne.s32.totalorder %s4744_s5, %s3444_s15  ;;  %p3451_p0 = scmp.lt.u32.totalorder %s3444_s15, %s4744_s5 }
  0x40   : > { %p3447_p12 = pnand %p3445_p11, %p3771_p8 }
  0x42   : > { %p3448_p13 = pneg %p3447_p12 }
  0x44   : > { %p3453_p2 = pnand %p3451_p0, %p3448_p13 }
  0x46   : > { %3456 = shalt.err (!%p3453_p2)
}
  0x47   : > { %s3457_s10 = scalar_lea.vmem %s3761_s13, 16  ;;  %s3464_s21 = scalar_lea.vmem %s3761_s13, 32 }
  0x48   : > { %p3458_p5 = scmp.ne.s32.totalorder %s3761_s13, %s3457_s10  ;;  %p3465_p4 = scmp.lt.s32.totalorder %s3761_s13, %s3761_s13 }
  0x49   : > { %p3466_p10 = scmp.lt.s32.totalorder %s3464_s21, %s3457_s10 }
  0x4a   : > { %p3460_p7 = pnand %p3458_p5, %p3771_p8 }
  0x4b   : > { %p3467_p11 = por %p3466_p10, %p3465_p4 }
  0x4c   : > { %p3461_p9 = pneg %p3460_p7 }
  0x4e   : > { %p3468_p12 = pnand %p3467_p11, %p3461_p9 }
  0x50   : > { %3471 = shalt.err (!%p3468_p12)
}
  0x51   : > { %3248 = dma.hbm_to_vmem [thread:$0]  (!%p3755_p6), %s4744_s5, 16, %s3761_s13, [#allocation12]  }
  0x52   : > { %s3671_s9 = smov [#allocation7]   ;;  %s3672_s14 = smov [#allocation10]  }
  0x53   : > { %s234_s12 = sshll.u32 %s3671_s9, 4  ;;  %s261_s15 = sshll.u32 %s3672_s14, 4  ;;  %s235_s12 = int_to_ptr.vmem [resolvable:$true] %s234_s12  ;;  %s262_s15 = int_to_ptr.vmem [resolvable:$true] %s261_s15 }
  0x54   : > { %s3472_s18 = scalar_lea.hbm %s4741_s2, 1536 }
  0x55   : > { %p3473_p13 = scmp.ne.s32.totalorder %s4741_s2, %s3472_s18  ;;  %p3479_p5 = scmp.lt.u32.totalorder %s3472_s18, %s4741_s2 }
  0x57   : > { %p3475_p0 = pnand %p3473_p13, %p3771_p8 }
  0x59   : > { %p3476_p2 = pneg %p3475_p0 }
  0x5b   : > { %p3481_p7 = pnand %p3479_p5, %p3476_p2 }
  0x5d   : > { %3484 = shalt.err (!%p3481_p7)
}
  0x5e   : > { %s3485_s13 = scalar_lea.vmem %s235_s12, 1536  ;;  %p3493_p11 = scmp.lt.s32.totalorder %s235_s12, %s235_s12 }
  0x5f   : > { %p3486_p9 = scmp.ne.s32.totalorder %s235_s12, %s3485_s13  ;;  %p3494_p12 = scmp.lt.s32.totalorder %s3485_s13, %s3485_s13 }
  0x61   : > { %p3488_p4 = pnand %p3486_p9, %p3771_p8  ;;  %p3495_p1 = por %p3494_p12, %p3493_p11 }
  0x63   : > { %p3489_p10 = pneg %p3488_p4 }
  0x65   : > { %p3496_p3 = pnand %p3495_p1, %p3489_p10 }
  0x67   : > { %3499 = shalt.err (!%p3496_p3)
}
  0x68   : > { %3239 = dma.hbm_to_vmem [thread:$0]  (!%p3755_p6), %s4741_s2, 1536, %s235_s12, [#allocation6], %s4749_s23, %s4749_s23, %s3670_s28  }
  0x69   : > { %s3500_s17 = scalar_lea.hbm %s4743_s4, 16 }
  0x6a   : > { %p3501_p1 = scmp.ne.s32.totalorder %s4743_s4, %s3500_s17  ;;  %p3507_p0 = scmp.lt.u32.totalorder %s3500_s17, %s4743_s4 }
  0x6c   : > { %p3503_p3 = pnand %p3501_p1, %p3771_p8 }
  0x6e   : > { %p3504_p13 = pneg %p3503_p3 }
  0x70   : > { %p3509_p2 = pnand %p3507_p0, %p3504_p13 }
  0x72   : > { %3512 = shalt.err (!%p3509_p2)
}
  0x73   : > { %s3513_s29 = scalar_lea.vmem %s262_s15, 16  ;;  %s3520_s12 = scalar_lea.vmem %s262_s15, 32 }
  0x74   : > { %p3514_p5 = scmp.ne.s32.totalorder %s262_s15, %s3513_s29  ;;  %p3521_p4 = scmp.lt.s32.totalorder %s262_s15, %s262_s15 }
  0x75   : > { %p3522_p10 = scmp.lt.s32.totalorder %s3520_s12, %s3513_s29 }
  0x76   : > { %p3516_p7 = pnand %p3514_p5, %p3771_p8 }
  0x77   : > { %p3523_p11 = por %p3522_p10, %p3521_p4 }
  0x78   : > { %p3517_p9 = pneg %p3516_p7 }
  0x7a   : > { %p3524_p12 = pnand %p3523_p11, %p3517_p9 }
  0x7c   : > { %3527 = shalt.err (!%p3524_p12)
}
  0x7d   : > { %3245 = dma.hbm_to_vmem [thread:$0]  (!%p3755_p6), %s4743_s4, 16, %s262_s15, [#allocation9]  }
  0x7e   : > { %s3673_s9 = smov [#allocation13]   ;;  %s3528_s18 = scalar_lea.hbm %s4745_s6, 16 }
  0x7f   : > { %s283_s14 = sshll.u32 %s3673_s9, 4  ;;  %p3529_p1 = scmp.ne.s32.totalorder %s4745_s6, %s3528_s18  ;;  %s284_s14 = int_to_ptr.vmem [resolvable:$true] %s283_s14 }
  0x80   : > { %p3535_p0 = scmp.lt.u32.totalorder %s3528_s18, %s4745_s6 }
  0x81   : > { %p3531_p3 = pnand %p3529_p1, %p3771_p8 }
  0x83   : > { %p3532_p13 = pneg %p3531_p3 }
  0x85   : > { %p3537_p2 = pnand %p3535_p0, %p3532_p13 }
  0x87   : > { %3540 = shalt.err (!%p3537_p2)
}
  0x88   : > { %s3541_s15 = scalar_lea.vmem %s284_s14, 16  ;;  %s3548_s12 = scalar_lea.vmem %s284_s14, 32 }
  0x89   : > { %p3542_p5 = scmp.ne.s32.totalorder %s284_s14, %s3541_s15  ;;  %p3549_p4 = scmp.lt.s32.totalorder %s284_s14, %s284_s14 }
  0x8a   : > { %p3550_p10 = scmp.lt.s32.totalorder %s3548_s12, %s3541_s15 }
  0x8b   : > { %p3544_p7 = pnand %p3542_p5, %p3771_p8 }
  0x8c   : > { %p3551_p11 = por %p3550_p10, %p3549_p4 }
  0x8d   : > { %p3545_p9 = pneg %p3544_p7 }
  0x8f   : > { %p3552_p12 = pnand %p3551_p11, %p3545_p9 }
  0x91   : > { %3555 = shalt.err (!%p3552_p12)
}
  0x92   : > { %3251 = dma.hbm_to_vmem [thread:$0]  (!%p3755_p6), %s4745_s6, 16, %s284_s14, [#allocation12]  }
  0x93   : > { %s2523_s19 = sadd.s32 4294967294, %s3664_s27   ;;  %s3904_s11 = sadd.s32 1, %s3664_s27  }
  0x94   : > { %s30_s9 = ssub.s32 %s3664_s27, %s3904_s11  ;;  %s33_s16 = sadd.s32 1, %s3660_s26 }
  0x95   : > { %p31_p8 = scmp.eq.s32.totalorder %s30_s9, 0  ;;  %p40_p1 = scmp.ne.s32.totalorder %s3660_s26, %s3656_s25 }
  0x96   : > { %p41_p3 = scmp.eq.s32.totalorder %s3664_s27, 0  ;;  %p46_p13 = scmp.ne.s32.totalorder %s3656_s25, %s3652_s24 }
  0x97   : > { %s3915_s17 = scalar_select %p31_p8, %s3660_s26, %s33_s16  }
  0x98   : > { %p3917_p0 = por %p41_p3, %p40_p1  ;;  %p4772_p2 = scmp.eq.s32.totalorder %s3739_s30, 0 }
  0x99   : > { %p196_p5 = scmp.eq.s32.totalorder %s3739_s30, 1  ;;  %p202_p7 = scmp.eq.s32.totalorder %s2523_s19, 1 }
  0x9a   : > { %p3923_p6 = por %p4772_p2, %p46_p13  ;;  %p3266_p9 = scmp.lt.s32.totalorder %s3664_s27, 2 }
  0x9b   : > { %s294_s20 = sand.u32 1, %s3660_s26   ;;  %p3930_p4 = por %p196_p5, %p40_p1 }
  0x9c   : > { %p3934_p10 = por %p202_p7, %p46_p13  ;;  %s2532_s29 = sshll.u32 %s294_s20, 7 }
  0x9d   : > { %s4774_s10 = scalar_select %p3930_p4, 1, 0 }
  0x9e   : > { %s4775_s21 = scalar_select %p3934_p10, 1, 0 }
  0x9f   : > { %s2691_s15 = sshll.u32 %s3664_s27, 11  ;;  %s298_s19 = scalar_lea.vmem [#allocation2], %s2532_s29 }
  0xa0   : > { %s3942_s22 = scalar_lea.hbm %s4739_s0, %s2691_s15  ;;  %s306_s9 = sshll.u32 %s298_s19, 4  ;;  %s3944_s9 = int_to_ptr.vmem [resolvable:$true] %s306_s9 }
  0xa1   : > { %p3948_p11 = pnand %p3266_p9, %p3917_p0  ;;  %s3952_s23 = scalar_lea.sflag [#allocation3], %s294_s20 }
  0xa2   : > { %s3556_s12 = scalar_lea.hbm %s3942_s22, 2048  ;;  %s3561_s18 = scalar_lea.hbm %s4739_s0, 4096 }
  0xa3   : > { %p3557_p12 = scmp.ne.s32.totalorder %s3942_s22, %s3556_s12  ;;  %p3558_p8 = pneg %p3948_p11 }
  0xa4   : > { %p3562_p13 = scmp.lt.u32.totalorder %s3942_s22, %s4739_s0  ;;  %p3563_p0 = scmp.lt.u32.totalorder %s3561_s18, %s3556_s12 }
  0xa5   : > { %p3559_p1 = pnand %p3558_p8, %p3557_p12  ;;  %p3565_p5 = scmp.lt.u32.totalorder %s3556_s12, %s3942_s22 }
  0xa6   : > { %p3564_p2 = por %p3563_p0, %p3562_p13 }
  0xa7   : > { %p3560_p3 = pneg %p3559_p1 }
  0xa8   : > { %p3566_p7 = por %p3565_p5, %p3564_p2 }
  0xaa   : > { %p3567_p9 = pnand %p3566_p7, %p3560_p3 }
  0xac   : > { %3570 = shalt.err (!%p3567_p9)
}
  0xad   : > { %s3571_s20 = scalar_lea.vmem %s3944_s9, 2048  ;;  %s3674_s29 = smov [#allocation2]  }
  0xae   : > { %p3572_p12 = scmp.ne.s32.totalorder %s3944_s9, %s3571_s20  ;;  %s3576_s15 = sshll.u32 %s3674_s29, 4  ;;  %s3577_s15 = int_to_ptr.vmem [resolvable:$false] %s3576_s15 }
  0xaf   : > { %s3578_s13 = scalar_lea.vmem %s3577_s15, 4096  ;;  %p3579_p4 = scmp.lt.s32.totalorder %s3944_s9, %s3577_s15 }
  0xb0   : > { %p3574_p1 = pnand %p3572_p12, %p3558_p8  ;;  %p3580_p13 = scmp.lt.s32.totalorder %s3578_s13, %s3571_s20 }
  0xb2   : > { %p3575_p10 = pneg %p3574_p1  ;;  %p3581_p0 = por %p3580_p13, %p3579_p4 }
  0xb4   : > { %p3582_p2 = pnand %p3581_p0, %p3575_p10 }
  0xb6   : > { %3585 = shalt.err (!%p3582_p2)
}
  0xb7   : > { %s4777_s12 = smov 64   ;;  %p4778_p8 = scmp.ne.s32.totalorder %s4768_s8, 0 }
  0xb8   : > { %3255 = dma.hbm_to_vmem [thread:$0]  (!%p3948_p11), %s3942_s22, 2048, %s3944_s9, %s3952_s23, %s4777_s12, %s4777_s12, %s3670_s28  }
  0xb9   : > { %318 = sbr.rel (%p4778_p8) target bundleno = 1107 (0x453), region = 48 }
  0xc0   : > { %s3986_s18 = sand.u32 1, %s3656_s25  }
  0xc1   : > { %s2537_s19 = sshll.u32 %s3986_s18, 7  ;;  %s321_s20 = scalar_lea.sflag [#allocation3], %s3986_s18 }
  0xc2   : > { %s3992_s16 = scalar_lea.vmem [#allocation2], %s2537_s19 }
  0xc3   : > { %3631 = dma.done.wait (%p3923_p6), %s321_s20, 2048  }
  0xc4   : > { %3633 = vsyncadd (%p3923_p6), %s321_s20, 4294965248  ;;  %p4779_p4 = scmp.eq.s32.totalorder %s3739_s30, 0 }
  0xc6   : > { %3635 = dma.done.wait (%p4779_p4), [#allocation6], 2560   ;;  %p4780_p10 = pmov %p4779_p4 }
  0xc7   : > { %p4781_p11 = pmov %p4779_p4 }
  0xc8   : > { %3637 = vsyncadd (%p4780_p10), [#allocation6], 4294964736 }
  0xc9   : > { %3639 = dma.done.wait (%p4781_p11), [#allocation9], 528   ;;  %p4782_p3 = pmov %p4779_p4 }
  0xcb   : > { %3641 = vsyncadd (%p4782_p3), [#allocation9], 4294966768  ;;  %p4783_p5 = pmov %p4782_p3 }
  0xcc   : > { %p4784_p7 = pmov %p4782_p3 }
  0xcd   : > { %3643 = dma.done.wait (%p4783_p5), [#allocation12], 32  }
  0xce   : > { %3645 = vsyncadd (%p4784_p7), [#allocation12], 4294967264  ;;  %v3316_v0 = vld [vmem:[#allocation5] sm:$0xff]   ;;  %v3317_v1 = vld [vmem:[#allocation5 + $0x8] sm:$0xff]   ;;  %v774_v29 = vlaneseq  ;;  %vm1054_vm2 = vcmask 523264   ;;  %s4632_s8 = scalar_lea.vmem [#allocation14], %s2537_s19 }
  0xcf   : > { %2925 = vmatprep.subr.bf16.mxu0 %v3316_v0  ;;  %v3318_v2 = vld [vmem:[#allocation5 + $0x10] sm:$0xff]   ;;  %v3319_v3 = vld [vmem:[#allocation5 + $0x18] sm:$0xff]   ;;  %v382_v4 = vld [vmem:[%s3992_s16] sm:$0xff]   ;;  %s2725_s23 = sshll.u32 %s3739_s30, 11  ;;  %s2393_s28 = sshll.u32 %s4632_s8, 4  ;;  %s4693_s28 = int_to_ptr.vmem [resolvable:$true] %s2393_s28 }
  0xd0   : > { %2926 = vmatpush3.bf16.msra.mxu0 %v3316_v0  ;;  %2941 = vmatprep.mubr.bf16.mxu0 %v382_v4  ;;  %v3320_v5 = vld [vmem:[#allocation5 + $0x20] sm:$0xff]   ;;  %v3321_v6 = vld [vmem:[#allocation5 + $0x28] sm:$0xff]   ;;  %v3322_v9 = vld [vmem:[#allocation5 + $0x30] sm:$0xff]   ;;  %v4032_v34 = vshrl.u32 %v774_v29, 7  ;;  %s4691_s9 = scalar_lea.hbm %s4746_s7, %s2725_s23  ;;  %s2379_s30 = scalar_lea.sflag [#allocation4], %s3986_s18 }
  0xd1   : > { %2927 = vmatprep.subr.bf16.mxu0 %v3317_v1  ;;  %v3340_v7 = vld [vmem:[#allocation7 + $0x20] sm:$0xff]   ;;  %v3341_v8 = vld [vmem:[#allocation7 + $0x28] sm:$0xff]   ;;  %v3323_v10 = vld [vmem:[#allocation5 + $0x38] sm:$0xff]   ;;  %s3586_s29 = scalar_lea.vmem %s4693_s28, 2048  ;;  %p4843_p9 = scmp.ne.s32.totalorder %s4774_s10, 0 }
  0xd2   : > { %3133 = vmatprep.subr.bf16.mxu1 %v3340_v7  ;;  %v384_v11 = vld [vmem:[%s3992_s16 + $0x8] sm:$0xff]   ;;  %v386_v12 = vld [vmem:[%s3992_s16 + $0x10] sm:$0xff]   ;;  %v388_v13 = vld [vmem:[%s3992_s16 + $0x18] sm:$0xff]   ;;  %vm815_vm0 = vcmp.lt.s32.totalorder %v4032_v34, 1  ;;  %vm916_vm1 = vcmp.lt.s32.totalorder %v4032_v34, 7  ;;  %v4042_v45 = vadd.s32 24, %v4032_v34  ;;  %p3587_p6 = scmp.ne.s32.totalorder %s4693_s28, %s3586_s29 }
  0xd3   : > { %3137 = vmatpush3.bf16.msra.mxu1 %v3340_v7  ;;  %v390_v14 = vld [vmem:[%s3992_s16 + $0x20] sm:$0xff]   ;;  %v392_v15 = vld [vmem:[%s3992_s16 + $0x28] sm:$0xff]   ;;  %v394_v16 = vld [vmem:[%s3992_s16 + $0x30] sm:$0xff]   ;;  %vm779_vm4 = vcmp.eq.s32.totalorder %v4032_v34, 0  ;;  %s3675_s15 = smov [#allocation14]  }
  0xd4   : > { %2928 = vmatpush3.bf16.msra.mxu0 %v3317_v1  ;;  %3134 = vmatprep.subr.bf16.mxu1 %v3341_v8  ;;  %v396_v17 = vld [vmem:[%s3992_s16 + $0x38] sm:$0xff]   ;;  %v398_v18 = vld [vmem:[%s3992_s16 + $0x40] sm:$0xff]   ;;  %v400_v19 = vld [vmem:[%s3992_s16 + $0x48] sm:$0xff]   ;;  %vm883_vm3 = vcmp.eq.s32.totalorder %v4042_v45, 31  ;;  %p3588_p12 = pnand %p3587_p6, %p4843_p9  ;;  %s3590_s13 = sshll.u32 %s3675_s15, 4  ;;  %s3591_s13 = int_to_ptr.vmem [resolvable:$false] %s3590_s13 }
  0xd5   : > { %2929 = vmatprep.subr.bf16.mxu0 %v3318_v2  ;;  %v402_v20 = vld [vmem:[%s3992_s16 + $0x50] sm:$0xff]   ;;  %v404_v21 = vld [vmem:[%s3992_s16 + $0x58] sm:$0xff]   ;;  %v406_v22 = vld [vmem:[%s3992_s16 + $0x60] sm:$0xff]   ;;  %s3592_s12 = scalar_lea.vmem %s3591_s13, 4096  ;;  %p3593_p13 = scmp.lt.s32.totalorder %s4693_s28, %s3591_s13 }
  0xd6   : > { %v408_v23 = vld [vmem:[%s3992_s16 + $0x68] sm:$0xff]   ;;  %v410_v24 = vld [vmem:[%s3992_s16 + $0x70] sm:$0xff]   ;;  %v412_v25 = vld [vmem:[%s3992_s16 + $0x78] sm:$0xff]   ;;  %p3589_p1 = pneg %p3588_p12  ;;  %p3594_p0 = scmp.lt.s32.totalorder %s3592_s12, %s3586_s29 }
  0xd7   : > { %3138 = vmatpush3.bf16.msra.mxu1 %v3341_v8  ;;  %v3342_v26 = vld [vmem:[#allocation7 + $0x30] sm:$0xff]   ;;  %v3343_v27 = vld [vmem:[#allocation7 + $0x38] sm:$0xff]   ;;  %v4026_v28 = vld [vmem:[#allocation7] sm:$0xff]  }
  0xd8   : > { %2930 = vmatpush3.bf16.msra.mxu0 %v3318_v2  ;;  %3135 = vmatprep.subr.bf16.mxu1 %v3342_v26  ;;  %v4029_v30 = vld [vmem:[#allocation10] ss:$0 sm:$0xff]  ;;  %v3350_v34 = vld [vmem:[#allocation7 + $0x50] sm:$0xff]   ;;  %v3351_v45 = vld [vmem:[#allocation7 + $0x58] sm:$0xff]   ;;  %p3595_p2 = por %p3594_p0, %p3593_p13 }
  0xd9   : > { %2931 = vmatprep.subr.bf16.mxu0 %v3319_v3 }
  0xda   : > { %p3596_p8 = pnand %p3595_p2, %p3589_p1 }
  0xdb   : > { %3139 = vmatpush3.bf16.msra.mxu1 %v3342_v26 }
  0xdc   : > { %2932 = vmatpush3.bf16.msra.mxu0 %v3319_v3  ;;  %3136 = vmatprep.subr.bf16.mxu1 %v3343_v27 }
  0xdd   : > { %2933 = vmatprep.subr.bf16.mxu0 %v3320_v5 }
  0xdf   : > { %3140 = vmatpush3.bf16.msra.mxu1 %v3343_v27 }
  0xe0   : > { %2934 = vmatpush3.bf16.msra.mxu0 %v3320_v5  ;;  %3013 = vmatprep.subr.bf16.mxu1 %v4026_v28 }
  0xe1   : > { %2935 = vmatprep.subr.bf16.mxu0 %v3321_v6 }
  0xe4   : > { %2936 = vmatpush3.bf16.msra.mxu0 %v3321_v6 }
  0xe5   : > { %2937 = vmatprep.subr.bf16.mxu0 %v3322_v9 }
  0xe8   : > { %2938 = vmatpush3.bf16.msra.mxu0 %v3322_v9 }
  0xe9   : > { %2939 = vmatprep.subr.bf16.mxu0 %v3323_v10 }
  0xec   : > { %2940 = vmatpush3.bf16.msra.mxu0 %v3323_v10 }
  0xed   : > { %2973 = vmatprep.subr.bf16.mxu0 %v3340_v7 }
  0xef   : > { %2942 = vmatmul.mubr.bf16.vlgmr.msra.gmra.mrb[0].mxu0 %v384_v11 }
  0xf0   : > { %2945 = vmatprep.mubr.bf16.mxu0 %v386_v12  ;;  %2974 = vmatpush3.bf16.msra.mxu0 %v3340_v7 }
  0xf1   : > { %2975 = vmatprep.subr.bf16.mxu0 %v3341_v8 }
  0xf4   : > { %2976 = vmatpush3.bf16.msra.mxu0 %v3341_v8 }
  0xf5   : > { %2977 = vmatprep.subr.bf16.mxu0 %v3342_v26 }
  0xf7   : > { %2946 = vmatmul.mubr.bf16.gmra.mrb[4].mxu0 %v388_v13 }
  0xf8   : > { %2949 = vmatprep.mubr.bf16.mxu0 %v390_v14  ;;  %2978 = vmatpush3.bf16.msra.mxu0 %v3342_v26 }
  0xf9   : > { %2979 = vmatprep.subr.bf16.mxu0 %v3343_v27 }
  0xfc   : > { %2980 = vmatpush3.bf16.msra.mxu0 %v3343_v27 }
  0xff   : > { %2950 = vmatmul.mubr.bf16.gmra.mrb[8].mxu0 %v392_v15 }
 0x100   : > { %2953 = vmatprep.mubr.bf16.mxu0 %v394_v16 }
 0x107   : > { %2954 = vmatmul.mubr.bf16.gmra.mrb[12].mxu0 %v396_v17 }
 0x108   : > { %2957 = vmatprep.mubr.bf16.mxu0 %v398_v18 }
 0x10f   : > { %2958 = vmatmul.mubr.bf16.gmra.mrb[16].mxu0 %v400_v19 }
 0x110   : > { %2961 = vmatprep.mubr.bf16.mxu0 %v402_v20 }
 0x117   : > { %2962 = vmatmul.mubr.bf16.gmra.mrb[20].mxu0 %v404_v21 }
 0x118   : > { %2965 = vmatprep.mubr.bf16.mxu0 %v406_v22 }
 0x11f   : > { %2966 = vmatmul.mubr.bf16.gmra.mrb[24].mxu0 %v408_v23 }
 0x120   : > { %2969 = vmatprep.mubr.bf16.mxu0 %v410_v24 }
 0x127   : > { %2970 = vmatmul.mubr.bf16.gmra.mrb[28].mxu0 %v412_v25 }
 0x1c2   : > { %v2943_v31 = vpop.f32.mrb[0].mxu0 }
 0x1c3   : > { %v624_v32 = vadd.f32 %v2943_v31, %v4029_v30  ;;  %v615_v33 = vpop.f32.mrb[1].mxu0 }
 0x1c4   : > { %v616_v35 = vadd.f32 %v4029_v30, %v615_v33  ;;  %v2944_v36 = vpop.f32.mrb[2].mxu0 }
 0x1c5   : > { %v744_v37 = vmax.f32 %v624_v32, 0.0  ;;  %v627_v38 = vadd.f32 %v2944_v36, %v4029_v30  ;;  %v618_v39 = vpop.f32.mrb[3].mxu0 }
 0x1c6   : > { %v4036_v40 = vmax.f32 %v616_v35, 0.0  ;;  %v619_v41 = vadd.f32 %v4029_v30, %v618_v39 }
 0x1c7   : > { %v745_v42 = vmax.f32 %v627_v38, 0.0  ;;  %v785_v43 = vrot.slane %v744_v37, 7  ;;  %v886_v46 = vrot.slane %v744_v37, 1 }
 0x1c8   : > { %v743_v44 = vmax.f32 %v619_v41, 0.0  ;;  %v4752_v50 = vrot.slane %v4036_v40, 7  ;;  %v4751_v55 = vrot.slane %v4036_v40, 1 }
 0x1c9   : > { %v786_v47 = vrot.slane %v745_v42, 7  ;;  %v887_v48 = vrot.slane %v745_v42, 1  ;;  %v1006_v49 = vpack.c.bf16 %v745_v42, %v744_v37 }
 0x1ca   : > { %v784_v51 = vrot.slane %v743_v44, 7  ;;  %v885_v52 = vrot.slane %v743_v44, 1  ;;  %v1005_v53 = vpack.c.bf16 %v743_v44, %v4036_v40  ;;  %v2947_v54 = vpop.f32.mrb[4].mxu0 }
 0x1cb   : > { %v4049_v56 = vsel %vm815_vm0, %v785_v43, %v786_v47  ;;  %v4053_v57 = vsel %vm916_vm1, %v886_v46, %v887_v48  ;;  %v640_v58 = vadd.f32 %v2947_v54, %v4029_v30  ;;  %v631_v59 = vpop.f32.mrb[5].mxu0 }
 0x1cc   : > { %v4058_v60 = vsel %vm815_vm0, %v784_v51, %v785_v43  ;;  %v632_v61 = vadd.f32 %v4029_v30, %v631_v59  ;;  %v2948_v62 = vpop.f32.mrb[6].mxu0  ;;  %2981 = vmatprep.mubr.msk.bf16.mxu0 %vm1054_vm2, %v1005_v53  ;;  %v4066_v63 = vsel %vm815_vm0, %v4752_v50, %v784_v51  ;;  %v4070_v0 = vsel %vm916_vm1, %v885_v52, %v886_v46 }
 0x1cd   : > { %v748_v2 = vmax.f32 %v640_v58, 0.0  ;;  %v643_v3 = vadd.f32 %v2948_v62, %v4029_v30  ;;  %v634_v4 = vpop.f32.mrb[7].mxu0  ;;  %2982 = vmatmul.mubr.msk.bf16.vlgmr.msra.gmra.mrb[32].mxu0 %vm1054_vm2, %v1006_v49  ;;  %v4080_v5 = vsel %vm916_vm1, %v4751_v55, %v885_v52 }
 0x1ce   : > { %v746_v6 = vmax.f32 %v632_v61, 0.0  ;;  %v635_v7 = vadd.f32 %v4029_v30, %v634_v4 }
 0x1cf   : > { %v749_v9 = vmax.f32 %v643_v3, 0.0  ;;  %v789_v10 = vrot.slane %v748_v2, 7  ;;  %v890_v14 = vrot.slane %v748_v2, 1 }
 0x1d0   : > { %v787_v11 = vrot.slane %v746_v6, 7  ;;  %v888_v12 = vrot.slane %v746_v6, 1  ;;  %v747_v13 = vmax.f32 %v635_v7, 0.0 }
 0x1d1   : > { %v790_v15 = vrot.slane %v749_v9, 7  ;;  %v891_v16 = vrot.slane %v749_v9, 1  ;;  %v1008_v17 = vpack.c.bf16 %v749_v9, %v748_v2 }
 0x1d2   : > { %v944_v18 = vsel %vm916_vm1, %v887_v48, %v888_v12  ;;  %v788_v19 = vrot.slane %v747_v13, 7  ;;  %v889_v20 = vrot.slane %v747_v13, 1  ;;  %v1007_v21 = vpack.c.bf16 %v747_v13, %v746_v6  ;;  %v2951_v22 = vpop.f32.mrb[8].mxu0 }
 0x1d3   : > { %v4091_v23 = vsel %vm883_vm3, 0.0, %v944_v18  ;;  %v656_v24 = vadd.f32 %v2951_v22, %v4029_v30  ;;  %v647_v25 = vpop.f32.mrb[9].mxu0  ;;  %v843_v26 = vsel %vm815_vm0, %v786_v47, %v787_v11  ;;  %v4098_v27 = vsel %vm815_vm0, %v789_v10, %v790_v15 }
 0x1d4   : > { %v648_v31 = vadd.f32 %v4029_v30, %v647_v25  ;;  %v2952_v32 = vpop.f32.mrb[10].mxu0  ;;  %2985 = vmatprep.mubr.msk.bf16.mxu0 %vm1054_vm2, %v1007_v21  ;;  %v4106_v33 = vsel %vm815_vm0, %v787_v11, %v788_v19  ;;  %v4110_v35 = vsel %vm779_vm4, 0.0, %v843_v26  ;;  %v4118_v41 = vsel %vm815_vm0, %v788_v19, %v789_v10  ;;  %v3347_v25 = vld [vmem:[#allocation7 + $0x18] sm:$0xff]  }
 0x1d5   : > { %v752_v36 = vmax.f32 %v656_v24, 0.0  ;;  %v659_v37 = vadd.f32 %v2952_v32, %v4029_v30  ;;  %v650_v38 = vpop.f32.mrb[11].mxu0  ;;  %2986 = vmatmul.mubr.msk.bf16.gmra.mrb[36].mxu0 %vm1054_vm2, %v1008_v17  ;;  %v4125_v46 = vsel %vm916_vm1, %v889_v20, %v890_v14  ;;  %v4129_v51 = vsel %vm916_vm1, %v888_v12, %v889_v20 }
 0x1d6   : > { %v750_v42 = vmax.f32 %v648_v31, 0.0  ;;  %v651_v43 = vadd.f32 %v4029_v30, %v650_v38  ;;  %v4135_v2 = vsel %vm916_vm1, %v890_v14, %v891_v16 }
 0x1d7   : > { %v793_v47 = vrot.slane %v752_v36, 7  ;;  %v894_v48 = vrot.slane %v752_v36, 1  ;;  %v753_v49 = vmax.f32 %v659_v37, 0.0 }
 0x1d8   : > { %v791_v52 = vrot.slane %v750_v42, 7  ;;  %v892_v53 = vrot.slane %v750_v42, 1  ;;  %v751_v54 = vmax.f32 %v651_v43, 0.0 }
 0x1d9   : > { %v794_v59 = vrot.slane %v753_v49, 7  ;;  %v895_v61 = vrot.slane %v753_v49, 1  ;;  %v1010_v62 = vpack.c.bf16 %v753_v49, %v752_v36 }
 0x1da   : > { %v792_v3 = vrot.slane %v751_v54, 7  ;;  %v893_v4 = vrot.slane %v751_v54, 1  ;;  %v1009_v6 = vpack.c.bf16 %v751_v54, %v750_v42  ;;  %v2955_v7 = vpop.f32.mrb[12].mxu0  ;;  %v839_v9 = vsel %vm815_vm0, %v790_v15, %v791_v52 }
 0x1db   : > { %v672_v10 = vadd.f32 %v2955_v7, %v4029_v30  ;;  %v663_v11 = vpop.f32.mrb[13].mxu0  ;;  %v4142_v12 = vsel %vm779_vm4, 0.0, %v839_v9  ;;  %v4146_v13 = vsel %vm815_vm0, %v793_v47, %v794_v59  ;;  %v940_v14 = vsel %vm916_vm1, %v891_v16, %v892_v53 }
 0x1dc   : > { %v664_v17 = vadd.f32 %v4029_v30, %v663_v11  ;;  %v2956_v18 = vpop.f32.mrb[14].mxu0  ;;  %2989 = vmatprep.mubr.msk.bf16.mxu0 %vm1054_vm2, %v1009_v6  ;;  %v4154_v15 = vsel %vm815_vm0, %v791_v52, %v792_v3  ;;  %v4158_v19 = vsel %vm815_vm0, %v792_v3, %v793_v47  ;;  %v4162_v20 = vsel %vm883_vm3, 0.0, %v940_v14 }
 0x1dd   : > { %v4164_v21 = vmax.f32 %v672_v10, 0.0  ;;  %v675_v16 = vadd.f32 %v2956_v18, %v4029_v30  ;;  %v666_v22 = vpop.f32.mrb[15].mxu0  ;;  %2990 = vmatmul.mubr.msk.bf16.gmra.mrb[40].mxu0 %vm1054_vm2, %v1010_v62  ;;  %v4177_v36 = vsel %vm916_vm1, %v893_v4, %v894_v48  ;;  %v4185_v43 = vsel %vm916_vm1, %v892_v53, %v893_v4  ;;  %v3345_v18 = vld [vmem:[#allocation7 + $0x8] sm:$0xff]  }
 0x1de   : > { %v754_v26 = vmax.f32 %v664_v17, 0.0  ;;  %v667_v31 = vadd.f32 %v4029_v30, %v666_v22  ;;  %4785 = vst [vmem:[#allocation20_spill] sm:$0xff] %v4185_v43  ;;  %v4195_v7 = vsel %vm916_vm1, %v894_v48, %v895_v61 }
 0x1df   : > { %v797_v37 = vrot.slane %v4164_v21, 7  ;;  %v898_v38 = vrot.slane %v4164_v21, 1  ;;  %v4181_v42 = vmax.f32 %v675_v16, 0.0  ;;  %4786 = vst [vmem:[#allocation21_spill] sm:$0xff] %v4195_v7 }
 0x1e0   : > { %v795_v47 = vrot.slane %v754_v26, 7  ;;  %v896_v49 = vrot.slane %v754_v26, 1  ;;  %v755_v52 = vmax.f32 %v667_v31, 0.0 }
 0x1e1   : > { %v798_v62 = vrot.slane %v4181_v42, 7  ;;  %v899_v3 = vrot.slane %v4181_v42, 1  ;;  %v1012_v6 = vpack.c.bf16 %v4181_v42, %v4164_v21 }
 0x1e2   : > { %v796_v9 = vrot.slane %v755_v52, 7  ;;  %v897_v53 = vrot.slane %v755_v52, 1  ;;  %v2959_v4 = vpop.f32.mrb[16].mxu0  ;;  %v1011_v10 = vpack.c.bf16 %v755_v52, %v754_v26  ;;  %v835_v11 = vsel %vm815_vm0, %v794_v59, %v795_v47 }
 0x1e3   : > { %v688_v14 = vadd.f32 %v2959_v4, %v4029_v30  ;;  %v679_v17 = vpop.f32.mrb[17].mxu0  ;;  %v4202_v16 = vsel %vm779_vm4, 0.0, %v835_v11  ;;  %v4206_v21 = vsel %vm815_vm0, %v797_v37, %v798_v62  ;;  %v936_v48 = vsel %vm916_vm1, %v895_v61, %v896_v49 }
 0x1e4   : > { %v680_v22 = vadd.f32 %v4029_v30, %v679_v17  ;;  %v2960_v26 = vpop.f32.mrb[18].mxu0  ;;  %2993 = vmatprep.mubr.msk.bf16.mxu1 %vm1054_vm2, %v1011_v10  ;;  %v4214_v59 = vsel %vm815_vm0, %v795_v47, %v796_v9  ;;  %v4218_v31 = vsel %vm815_vm0, %v796_v9, %v797_v37  ;;  %v4222_v42 = vsel %vm883_vm3, 0.0, %v936_v48 }
 0x1e5   : > { %4787 = vst [vmem:[#allocation22_spill] sm:$0xff] %v4222_v42  ;;  %v4224_v52 = vmax.f32 %v688_v14, 0.0  ;;  %v691_v61 = vadd.f32 %v2960_v26, %v4029_v30  ;;  %v682_v4 = vpop.f32.mrb[19].mxu0  ;;  %2994 = vmatmul.mubr.msk.bf16.vlgmr.msra.gmra.mrb[0].mxu1 %vm1054_vm2, %v1012_v6  ;;  %v4238_v14 = vsel %vm916_vm1, %v897_v53, %v898_v38  ;;  %v3346_v26 = vld [vmem:[#allocation7 + $0x10] sm:$0xff]   ;;  %v4256_v29 = vsel %vm916_vm1, %v898_v38, %v899_v3 }
 0x1e6   : > { %v758_v11 = vmax.f32 %v680_v22, 0.0  ;;  %v683_v37 = vadd.f32 %v4029_v30, %v682_v4  ;;  %3014 = vmatpush3.bf16.msra.mxu1 %v4026_v28  ;;  %4788 = vst [vmem:[#allocation23_spill] sm:$0xff] %v4238_v14  ;;  %v4246_v22 = vsel %vm916_vm1, %v896_v49, %v897_v53  ;;  %4790 = vst [vmem:[#allocation25_spill] sm:$0xff] %v4256_v29 }
 0x1e7   : > { %v801_v6 = vrot.slane %v4224_v52, 7  ;;  %v902_v17 = vrot.slane %v4224_v52, 1  ;;  %v4242_v48 = vmax.f32 %v691_v61, 0.0  ;;  %3015 = vmatprep.subr.bf16.mxu1 %v3345_v18  ;;  %4789 = vst [vmem:[#allocation24_spill] sm:$0xff] %v4246_v22 }
 0x1e8   : > { %v799_v28 = vrot.slane %v758_v11, 7  ;;  %v900_v4 = vrot.slane %v758_v11, 1  ;;  %v759_v54 = vmax.f32 %v683_v37, 0.0 }
 0x1e9   : > { %v802_v32 = vrot.slane %v4242_v48, 7  ;;  %v903_v58 = vrot.slane %v4242_v48, 1  ;;  %v1014_v61 = vpack.c.bf16 %v4242_v48, %v4224_v52 }
 0x1ea   : > { %v800_v8 = vrot.slane %v759_v54, 7  ;;  %v901_v49 = vrot.slane %v759_v54, 1  ;;  %v1013_v53 = vpack.c.bf16 %v759_v54, %v758_v11  ;;  %v2963_v47 = vpop.f32.mrb[20].mxu0  ;;  %3016 = vmatpush3.bf16.msra.mxu1 %v3345_v18  ;;  %v831_v37 = vsel %vm815_vm0, %v798_v62, %v799_v28 }
 0x1eb   : > { %v704_v9 = vadd.f32 %v2963_v47, %v4029_v30  ;;  %v695_v10 = vpop.f32.mrb[21].mxu0  ;;  %3017 = vmatprep.subr.bf16.mxu1 %v3346_v26  ;;  %v4263_v52 = vsel %vm779_vm4, 0.0, %v831_v37  ;;  %v4267_v38 = vsel %vm815_vm0, %v801_v6, %v802_v32  ;;  %v932_v54 = vsel %vm916_vm1, %v899_v3, %v900_v4 }
 0x1ec   : > { %v696_v18 = vadd.f32 %v4029_v30, %v695_v10  ;;  %v2964_v11 = vpop.f32.mrb[22].mxu0  ;;  %2997 = vmatprep.mubr.msk.bf16.mxu1 %vm1054_vm2, %v1013_v53  ;;  %v4275_v62 = vsel %vm815_vm0, %v799_v28, %v800_v8  ;;  %v4279_v47 = vsel %vm815_vm0, %v800_v8, %v801_v6  ;;  %v4283_v48 = vsel %vm883_vm3, 0.0, %v932_v54  ;;  %v4304_v53 = vld [vmem:[#allocation7 + $0x40] sm:$0xff]  }
 0x1ed   : > { %4791 = vst [vmem:[#allocation26_spill] sm:$0xff] %v4283_v48  ;;  %v4285_v37 = vmax.f32 %v704_v9, 0.0  ;;  %v707_v3 = vadd.f32 %v2964_v11, %v4029_v30  ;;  %v698_v10 = vpop.f32.mrb[23].mxu0  ;;  %2998 = vmatmul.mubr.msk.bf16.gmra.mrb[4].mxu1 %vm1054_vm2, %v1014_v61  ;;  %v4298_v9 = vsel %vm916_vm1, %v901_v49, %v902_v17  ;;  %v4318_v1 = vsel %vm916_vm1, %v902_v17, %v903_v58 }
 0x1ee   : > { %v762_v24 = vmax.f32 %v696_v18, 0.0  ;;  %v699_v8 = vadd.f32 %v4029_v30, %v698_v10  ;;  %3018 = vmatpush3.bf16.msra.mxu1 %v3346_v26  ;;  %4792 = vst [vmem:[#allocation27_spill] sm:$0xff] %v4298_v9  ;;  %v4308_v18 = vsel %vm916_vm1, %v900_v4, %v901_v49  ;;  %4794 = vst [vmem:[#allocation29_spill] sm:$0xff] %v4318_v1 }
 0x1ef   : > { %v805_v54 = vrot.slane %v4285_v37, 7  ;;  %v906_v61 = vrot.slane %v4285_v37, 1  ;;  %v4302_v11 = vmax.f32 %v707_v3, 0.0  ;;  %3019 = vmatprep.subr.bf16.mxu1 %v3347_v25  ;;  %4793 = vst [vmem:[#allocation28_spill] sm:$0xff] %v4308_v18 }
 0x1f0   : > { %v803_v26 = vrot.slane %v762_v24, 7  ;;  %v904_v10 = vrot.slane %v762_v24, 1  ;;  %v763_v6 = vmax.f32 %v699_v8, 0.0 }
 0x1f1   : > { %v806_v44 = vrot.slane %v4302_v11, 7  ;;  %v907_v39 = vrot.slane %v4302_v11, 1  ;;  %v1016_v3 = vpack.c.bf16 %v4302_v11, %v4285_v37 }
 0x1f2   : > { %v804_v55 = vrot.slane %v763_v6, 7  ;;  %v905_v4 = vrot.slane %v763_v6, 1  ;;  %v1015_v49 = vpack.c.bf16 %v763_v6, %v762_v24  ;;  %v2967_v50 = vpop.f32.mrb[24].mxu0  ;;  %3020 = vmatpush3.bf16.msra.mxu1 %v3347_v25  ;;  %v827_v8 = vsel %vm815_vm0, %v802_v32, %v803_v26 }
 0x1f3   : > { %v720_v28 = vadd.f32 %v2967_v50, %v4029_v30  ;;  %v711_v18 = vpop.f32.mrb[25].mxu0  ;;  %3053 = vmatprep.subr.bf16.mxu1 %v4304_v53  ;;  %v4326_v37 = vsel %vm779_vm4, 0.0, %v827_v8  ;;  %v4330_v17 = vsel %vm815_vm0, %v805_v54, %v806_v44  ;;  %v928_v24 = vsel %vm916_vm1, %v903_v58, %v904_v10 }
 0x1f4   : > { %v712_v25 = vadd.f32 %v4029_v30, %v711_v18  ;;  %v2968_v6 = vpop.f32.mrb[26].mxu0  ;;  %3001 = vmatprep.mubr.msk.bf16.mxu1 %vm1054_vm2, %v1015_v49  ;;  %v4338_v50 = vsel %vm815_vm0, %v803_v26, %v804_v55  ;;  %v4342_v32 = vsel %vm815_vm0, %v804_v55, %v805_v54  ;;  %v4346_v11 = vsel %vm883_vm3, 0.0, %v928_v24 }
 0x1f5   : > { %4795 = vst [vmem:[#allocation30_spill] sm:$0xff] %v4346_v11  ;;  %v768_v8 = vmax.f32 %v720_v28, 0.0  ;;  %v723_v58 = vadd.f32 %v2968_v6, %v4029_v30  ;;  %v714_v9 = vpop.f32.mrb[27].mxu0  ;;  %3002 = vmatmul.mubr.msk.bf16.gmra.mrb[8].mxu1 %vm1054_vm2, %v1016_v3  ;;  %v4359_v28 = vsel %vm916_vm1, %v905_v4, %v906_v61  ;;  %v4363_v3 = vsel %vm916_vm1, %v904_v10, %v905_v4 }
 0x1f6   : > { %v766_v49 = vmax.f32 %v712_v25, 0.0  ;;  %v715_v55 = vadd.f32 %v4029_v30, %v714_v9  ;;  %4796 = vst [vmem:[#allocation31_spill] sm:$0xff] %v4359_v28  ;;  %4797 = vst [vmem:[#allocation32_spill] sm:$0xff] %v4363_v3  ;;  %v4369_v1 = vsel %vm916_vm1, %v906_v61, %v907_v39 }
 0x1f7   : > { %v809_v24 = vrot.slane %v768_v8, 7  ;;  %v910_v6 = vrot.slane %v768_v8, 1  ;;  %v769_v29 = vmax.f32 %v723_v58, 0.0  ;;  %4798 = vst [vmem:[#allocation33_spill] sm:$0xff] %v4369_v1 }
 0x1f8   : > { %v807_v18 = vrot.slane %v766_v49, 7  ;;  %v908_v48 = vrot.slane %v766_v49, 1  ;;  %v767_v26 = vmax.f32 %v715_v55, 0.0 }
 0x1f9   : > { %v810_v25 = vrot.slane %v769_v29, 7  ;;  %v911_v22 = vrot.slane %v769_v29, 1  ;;  %v1018_v54 = vpack.c.bf16 %v769_v29, %v768_v8 }
 0x1fa   : > { %v808_v11 = vrot.slane %v767_v26, 7  ;;  %v909_v14 = vrot.slane %v767_v26, 1  ;;  %v1017_v58 = vpack.c.bf16 %v767_v26, %v766_v49  ;;  %v2971_v7 = vpop.f32.mrb[28].mxu0  ;;  %v823_v10 = vsel %vm815_vm0, %v806_v44, %v807_v18 }
 0x1fb   : > { %v736_v4 = vadd.f32 %v2971_v7, %v4029_v30  ;;  %v727_v55 = vpop.f32.mrb[29].mxu0  ;;  %v4376_v9 = vsel %vm779_vm4, 0.0, %v823_v10  ;;  %v4380_v29 = vsel %vm815_vm0, %v809_v24, %v810_v25  ;;  %v924_v61 = vsel %vm916_vm1, %v907_v39, %v908_v48 }
 0x1fc   : > { %v728_v8 = vadd.f32 %v4029_v30, %v727_v55  ;;  %v2972_v26 = vpop.f32.mrb[30].mxu0  ;;  %3005 = vmatprep.mubr.msk.bf16.mxu1 %vm1054_vm2, %v1017_v58  ;;  %v4388_v44 = vsel %vm815_vm0, %v807_v18, %v808_v11  ;;  %v4392_v7 = vsel %vm815_vm0, %v808_v11, %v809_v24  ;;  %v4396_v49 = vsel %vm883_vm3, 0.0, %v924_v61 }
 0x1fd   : > { %4799 = vst [vmem:[#allocation34_spill] sm:$0xff] %v4396_v49  ;;  %v772_v10 = vmax.f32 %v736_v4, 0.0  ;;  %v739_v39 = vadd.f32 %v2972_v26, %v4029_v30  ;;  %v730_v3 = vpop.f32.mrb[31].mxu0  ;;  %3006 = vmatmul.mubr.msk.bf16.gmra.mrb[12].mxu1 %vm1054_vm2, %v1018_v54  ;;  %v4409_v4 = vsel %vm916_vm1, %v909_v14, %v910_v6  ;;  %v4413_v54 = vsel %vm916_vm1, %v908_v48, %v909_v14 }
 0x1fe   : > { %v770_v55 = vmax.f32 %v728_v8, 0.0  ;;  %v731_v11 = vadd.f32 %v4029_v30, %v730_v3  ;;  %v4419_v1 = vsel %vm916_vm1, %v910_v6, %v911_v22  ;;  %v4800_v48 = vrot.slane %v4036_v40, 7 }
 0x1ff   : > { %v813_v61 = vrot.slane %v772_v10, 7  ;;  %v914_v26 = vrot.slane %v772_v10, 1  ;;  %v773_v28 = vmax.f32 %v739_v39, 0.0 }
 0x200   : > { %v811_v58 = vrot.slane %v770_v55, 7  ;;  %v912_v42 = vrot.slane %v770_v55, 1  ;;  %v771_v18 = vmax.f32 %v731_v11, 0.0 }
 0x201   : > { %v814_v3 = vrot.slane %v773_v28, 7  ;;  %v915_v8 = vrot.slane %v773_v28, 1  ;;  %v1020_v24 = vpack.c.bf16 %v773_v28, %v772_v10 }
 0x202   : > { %v812_v49 = vrot.slane %v771_v18, 7  ;;  %v913_v43 = vrot.slane %v771_v18, 1  ;;  %v1019_v39 = vpack.c.bf16 %v771_v18, %v770_v55  ;;  %v819_v14 = vsel %vm815_vm0, %v810_v25, %v811_v58 }
 0x203   : > { %v847_v11 = vsel %vm815_vm0, %v814_v3, %v4800_v48  ;;  %v876_v30 = vsel %vm779_vm4, 0.0, %v819_v14  ;;  %v816_v28 = vsel %vm815_vm0, %v813_v61, %v814_v3  ;;  %v920_v6 = vsel %vm916_vm1, %v911_v22, %v912_v42 }
 0x204   : > { %3009 = vmatprep.mubr.msk.bf16.mxu1 %vm1054_vm2, %v1019_v39  ;;  %v848_v10 = vsel %vm779_vm4, 0.0, %v847_v11  ;;  %v818_v25 = vsel %vm815_vm0, %v811_v58, %v812_v49  ;;  %v817_v18 = vsel %vm815_vm0, %v812_v49, %v813_v61  ;;  %v976_v55 = vsel %vm883_vm3, 0.0, %v920_v6  ;;  %v3349_v11 = vld [vmem:[#allocation7 + $0x48] sm:$0xff]  }
 0x205   : > { %3010 = vmatmul.mubr.msk.bf16.gmra.mrb[16].mxu1 %vm1054_vm2, %v1020_v24  ;;  %v981_v3 = vpack.c.bf16 %v4066_v63, %v848_v10  ;;  %v995_v14 = vpack.c.bf16 %v818_v25, %v876_v30  ;;  %v996_v22 = vpack.c.bf16 %v816_v28, %v817_v18  ;;  %v1510_v39 = vpack.c.bf16 %v976_v55, %v4419_v1 }
 0x206   : > { %v918_v48 = vsel %vm916_vm1, %v913_v43, %v914_v26  ;;  %v919_v58 = vsel %vm916_vm1, %v912_v42, %v913_v43  ;;  %v917_v49 = vsel %vm916_vm1, %v914_v26, %v915_v8  ;;  %v4801_v61 = vrot.slane %v4036_v40, 1  ;;  %v4840_v26 = vld [vmem:[#allocation33_spill] sm:$0xff] }
 0x207   : > { %3021 = vmatprep.mubr.msk.bf16.mxu1 %vm1054_vm2, %v981_v3  ;;  %v1511_v63 = vpack.c.bf16 %v918_v48, %v919_v58  ;;  %v4802_v28 = vpack.c.bf16 %v4049_v56, %v4058_v60  ;;  %v4803_v40 = vpack.c.bf16 %v4106_v33, %v4110_v35  ;;  %v4804_v43 = vpack.c.bf16 %v4098_v27, %v4118_v41  ;;  %v3354_v3 = vld [vmem:[#allocation8 + $0x10] sm:$0xff]   ;;  %v3355_v58 = vld [vmem:[#allocation8 + $0x18] sm:$0xff]  }
 0x208   : > { %v948_v24 = vsel %vm916_vm1, %v915_v8, %v4801_v61  ;;  %v4805_v56 = vpack.c.bf16 %v4154_v15, %v4142_v12  ;;  %v4806_v60 = vpack.c.bf16 %v4146_v13, %v4158_v19  ;;  %v4807_v33 = vpack.c.bf16 %v4214_v59, %v4202_v16  ;;  %v3352_v13 = vld [vmem:[#allocation8] sm:$0xff]   ;;  %v3353_v15 = vld [vmem:[#allocation8 + $0x8] sm:$0xff]  }
 0x209   : > { %v980_v1 = vsel %vm883_vm3, 0.0, %v948_v24  ;;  %v4808_v27 = vpack.c.bf16 %v4206_v21, %v4218_v31  ;;  %v4809_v35 = vpack.c.bf16 %v4275_v62, %v4263_v52  ;;  %v4810_v41 = vpack.c.bf16 %v4267_v38, %v4279_v47  ;;  %3093 = vmatprep.subr.bf16.mxu0 %v3352_v13  ;;  %v4819_v38 = vld [vmem:[#allocation20_spill] sm:$0xff]  ;;  %v4822_v62 = vld [vmem:[#allocation21_spill] sm:$0xff] }
 0x20a   : > { %v1512_v30 = vpack.c.bf16 %v980_v1, %v917_v49  ;;  %v4811_v12 = vpack.c.bf16 %v4338_v50, %v4326_v37  ;;  %v4812_v19 = vpack.c.bf16 %v4330_v17, %v4342_v32  ;;  %v4813_v16 = vpack.c.bf16 %v4388_v44, %v4376_v9  ;;  %3094 = vmatpush3.bf16.msra.mxu0 %v3352_v13  ;;  %v4825_v47 = vld [vmem:[#allocation24_spill] sm:$0xff]  ;;  %v4833_v17 = vld [vmem:[#allocation30_spill] sm:$0xff]  ;;  %v4834_v50 = vld [vmem:[#allocation29_spill] sm:$0xff] }
 0x20b   : > { %3095 = vmatprep.subr.bf16.mxu0 %v3353_v15  ;;  %v4814_v21 = vpack.c.bf16 %v4380_v29, %v4392_v7  ;;  %v4815_v59 = vpack.c.bf16 %v4070_v0, %v4080_v5  ;;  %v4816_v31 = vpack.c.bf16 %v4091_v23, %v4053_v57  ;;  %v4817_v42 = vpack.c.bf16 %v4125_v46, %v4129_v51  ;;  %v4821_v5 = vld [vmem:[#allocation22_spill] sm:$0xff]  ;;  %v4824_v23 = vld [vmem:[#allocation23_spill] sm:$0xff]  ;;  %v4831_v37 = vld [vmem:[#allocation28_spill] sm:$0xff] }
 0x20c   : > { %v4818_v52 = vpack.c.bf16 %v4162_v20, %v4135_v2  ;;  %v4820_v0 = vpack.c.bf16 %v4177_v36, %v4819_v38  ;;  %v4823_v57 = vpack.c.bf16 %v4821_v5, %v4822_v62  ;;  %v4826_v46 = vpack.c.bf16 %v4824_v23, %v4825_v47  ;;  %v4827_v51 = vld [vmem:[#allocation26_spill] sm:$0xff]  ;;  %v4830_v20 = vld [vmem:[#allocation27_spill] sm:$0xff]  ;;  %v4837_v29 = vld [vmem:[#allocation32_spill] sm:$0xff] }
 0x20d   : > { %3022 = vmatmul.mubr.msk.bf16.vlgmr.msra.gmra.mrb[20].mxu1 %vm1054_vm2, %v4802_v28  ;;  %v4832_v36 = vpack.c.bf16 %v4830_v20, %v4831_v37  ;;  %v4835_v32 = vpack.c.bf16 %v4833_v17, %v4834_v50  ;;  %v4836_v9 = vld [vmem:[#allocation31_spill] sm:$0xff]  ;;  %v4839_v7 = vld [vmem:[#allocation34_spill] sm:$0xff]  ;;  %v4842_v6 = vpack.c.bf16 %v4409_v4, %v4413_v54 }
 0x20e   : > { %3054 = vmatpush3.bf16.msra.mxu1 %v4304_v53  ;;  %3025 = vmatprep.mubr.msk.bf16.mxu1 %vm1054_vm2, %v4803_v40  ;;  %v4828_v53 = vld [vmem:[#allocation25_spill] sm:$0xff]  ;;  %v4838_v44 = vpack.c.bf16 %v4836_v9, %v4837_v29  ;;  %v4841_v8 = vpack.c.bf16 %v4839_v7, %v4840_v26 }
 0x20f   : > { %3055 = vmatprep.subr.bf16.mxu1 %v3349_v11  ;;  %3096 = vmatpush3.bf16.msra.mxu0 %v3353_v15  ;;  %v4829_v2 = vpack.c.bf16 %v4827_v51, %v4828_v53 }
 0x210   : > { %3097 = vmatprep.subr.bf16.mxu0 %v3354_v3 }
 0x212   : > { %3056 = vmatpush3.bf16.msra.mxu1 %v3349_v11 }
 0x213   : > { %3057 = vmatprep.subr.bf16.mxu1 %v3350_v34  ;;  %3098 = vmatpush3.bf16.msra.mxu0 %v3354_v3 }
 0x214   : > { %3099 = vmatprep.subr.bf16.mxu0 %v3355_v58 }
 0x215   : > { %3026 = vmatmul.mubr.msk.bf16.gmra.mrb[24].mxu1 %vm1054_vm2, %v4804_v43 }
 0x216   : > { %3029 = vmatprep.mubr.msk.bf16.mxu1 %vm1054_vm2, %v4805_v56  ;;  %3058 = vmatpush3.bf16.msra.mxu1 %v3350_v34 }
 0x217   : > { %3059 = vmatprep.subr.bf16.mxu1 %v3351_v45  ;;  %3100 = vmatpush3.bf16.msra.mxu0 %v3355_v58 }
 0x21a   : > { %3060 = vmatpush3.bf16.msra.mxu1 %v3351_v45 }
 0x21d   : > { %3030 = vmatmul.mubr.msk.bf16.gmra.mrb[28].mxu1 %vm1054_vm2, %v4806_v60 }
 0x21e   : > { %3033 = vmatprep.mubr.msk.bf16.mxu1 %vm1054_vm2, %v4807_v33 }
 0x225   : > { %3034 = vmatmul.mubr.msk.bf16.gmra.mrb[0].mxu1 %vm1054_vm2, %v4808_v27 }
 0x226   : > { %3037 = vmatprep.mubr.msk.bf16.mxu1 %vm1054_vm2, %v4809_v35 }
 0x22d   : > { %3038 = vmatmul.mubr.msk.bf16.gmra.mrb[4].mxu1 %vm1054_vm2, %v4810_v41 }
 0x22e   : > { %3041 = vmatprep.mubr.msk.bf16.mxu1 %vm1054_vm2, %v4811_v12 }
 0x235   : > { %3042 = vmatmul.mubr.msk.bf16.gmra.mrb[8].mxu1 %vm1054_vm2, %v4812_v19 }
 0x236   : > { %3045 = vmatprep.mubr.msk.bf16.mxu1 %vm1054_vm2, %v4813_v16 }
 0x23d   : > { %3046 = vmatmul.mubr.msk.bf16.gmra.mrb[12].mxu1 %vm1054_vm2, %v4814_v21 }
 0x23e   : > { %3049 = vmatprep.mubr.msk.bf16.mxu1 %vm1054_vm2, %v995_v14 }
 0x245   : > { %3050 = vmatmul.mubr.msk.bf16.gmra.mrb[16].mxu1 %vm1054_vm2, %v996_v22 }
 0x246   : > { %3061 = vmatprep.mubr.msk.bf16.mxu1 %vm1054_vm2, %v4815_v59 }
 0x24d   : > { %3062 = vmatmul.mubr.msk.bf16.vlgmr.msra.gmra.mrb[20].mxu1 %vm1054_vm2, %v4816_v31 }
 0x24e   : > { %3065 = vmatprep.mubr.msk.bf16.mxu1 %vm1054_vm2, %v4817_v42 }
 0x255   : > { %3066 = vmatmul.mubr.msk.bf16.gmra.mrb[24].mxu1 %vm1054_vm2, %v4818_v52 }
 0x256   : > { %3069 = vmatprep.mubr.msk.bf16.mxu1 %vm1054_vm2, %v4820_v0 }
 0x25d   : > { %3070 = vmatmul.mubr.msk.bf16.gmra.mrb[28].mxu1 %vm1054_vm2, %v4823_v57 }
 0x25e   : > { %3073 = vmatprep.mubr.msk.bf16.mxu1 %vm1054_vm2, %v4826_v46 }
 0x265   : > { %3074 = vmatmul.mubr.msk.bf16.gmra.mrb[0].mxu1 %vm1054_vm2, %v4829_v2 }
 0x266   : > { %3077 = vmatprep.mubr.msk.bf16.mxu1 %vm1054_vm2, %v4832_v36 }
 0x26d   : > { %3078 = vmatmul.mubr.msk.bf16.gmra.mrb[4].mxu1 %vm1054_vm2, %v4835_v32 }
 0x26e   : > { %3081 = vmatprep.mubr.msk.bf16.mxu1 %vm1054_vm2, %v4838_v44 }
 0x275   : > { %3082 = vmatmul.mubr.msk.bf16.gmra.mrb[8].mxu1 %vm1054_vm2, %v4841_v8 }
 0x276   : > { %3085 = vmatprep.mubr.msk.bf16.mxu1 %vm1054_vm2, %v4842_v6 }
 0x27d   : > { %3086 = vmatmul.mubr.msk.bf16.gmra.mrb[12].mxu1 %vm1054_vm2, %v1510_v39 }
 0x27e   : > { %3089 = vmatprep.mubr.msk.bf16.mxu1 %vm1054_vm2, %v1511_v63  ;;  %v4568_v63 = vld [vmem:[#allocation11] ss:$0 sm:$0xff] }
 0x285   : > { %3090 = vmatmul.mubr.msk.bf16.gmra.mrb[16].mxu1 %vm1054_vm2, %v1512_v30 }
 0x2a0   : > { %v2983_v10 = vpop.f32.mrb[32].mxu0 }
 0x2a1   : > { %v1137_v25 = vpop.f32.mrb[33].mxu0 }
 0x2a2   : > { %v2984_v18 = vpop.f32.mrb[34].mxu0 }
 0x2a3   : > { %v1140_v55 = vpop.f32.mrb[35].mxu0 }
 0x2a8   : > { %v2987_v14 = vpop.f32.mrb[36].mxu0 }
 0x2a9   : > { %v1153_v22 = vpop.f32.mrb[37].mxu0 }
 0x2aa   : > { %v2988_v48 = vpop.f32.mrb[38].mxu0 }
 0x2ab   : > { %v1156_v4 = vpop.f32.mrb[39].mxu0 }
 0x2b0   : > { %v2991_v54 = vpop.f32.mrb[40].mxu0 }
 0x2b1   : > { %v1169_v39 = vpop.f32.mrb[41].mxu0 }
 0x2b2   : > { %v2992_v49 = vpop.f32.mrb[42].mxu0 }
 0x2b3   : > { %v1172_v61 = vpop.f32.mrb[43].mxu0 }
 0x320   : > { %v3063_v24 = vpop.f32.mrb[20].mxu1 }
 0x321   : > { %v3141_v1 = vadd.f32 %v3063_v24, %v2983_v10  ;;  %v1628_v30 = vpop.f32.mrb[21].mxu1 }
 0x322   : > { %v3142_v11 = vadd.f32 %v1628_v30, %v1137_v25  ;;  %v3064_v28 = vpop.f32.mrb[22].mxu1 }
 0x323   : > { %v1796_v40 = vadd.f32 %v3141_v1, %v4568_v63  ;;  %v3143_v34 = vadd.f32 %v3064_v28, %v2984_v18  ;;  %v1631_v45 = vpop.f32.mrb[23].mxu1 }
 0x324   : > { %v1794_v43 = vadd.f32 %v3142_v11, %v4568_v63  ;;  %v3144_v56 = vadd.f32 %v1631_v45, %v1140_v55 }
 0x325   : > { %v1797_v60 = vadd.f32 %v3143_v34, %v4568_v63  ;;  %v1828_v27 = vmax.f32 %v1796_v40, 0.0 }
 0x326   : > { %v1795_v33 = vadd.f32 %v3144_v56, %v4568_v63  ;;  %v1826_v41 = vmax.f32 %v1794_v43, 0.0 }
 0x327   : > { %v1829_v35 = vmax.f32 %v1797_v60, 0.0 }
 0x328   : > { %v1827_v12 = vmax.f32 %v1795_v33, 0.0  ;;  %v3067_v13 = vpop.f32.mrb[24].mxu1 }
 0x329   : > { %v1859_v15 = vpack.c.bf16 %v1829_v35, %v1828_v27  ;;  %v3145_v19 = vadd.f32 %v3067_v13, %v2987_v14  ;;  %v1644_v16 = vpop.f32.mrb[25].mxu1 }
 0x32a   : > { %v1858_v21 = vpack.c.bf16 %v1827_v12, %v1826_v41  ;;  %v3146_v59 = vadd.f32 %v1644_v16, %v1153_v22  ;;  %v3068_v31 = vpop.f32.mrb[26].mxu1 }
 0x32b   : > { %v1800_v42 = vadd.f32 %v3145_v19, %v4568_v63  ;;  %v3147_v52 = vadd.f32 %v3068_v31, %v2988_v48  ;;  %v1647_v38 = vpop.f32.mrb[27].mxu1 }
 0x32c   : > { %v1798_v0 = vadd.f32 %v3146_v59, %v4568_v63  ;;  %v3148_v5 = vadd.f32 %v1647_v38, %v1156_v4  ;;  %3101 = vmatprep.mubr.msk.bf16.mxu0 %vm1054_vm2, %v1858_v21 }
 0x32d   : > { %v1801_v62 = vadd.f32 %v3147_v52, %v4568_v63  ;;  %3102 = vmatmul.mubr.msk.bf16.vlgmr.msra.gmra.mrb[44].mxu0 %vm1054_vm2, %v1859_v15  ;;  %v1832_v23 = vmax.f32 %v1800_v42, 0.0 }
 0x32e   : > { %v1799_v57 = vadd.f32 %v3148_v5, %v4568_v63  ;;  %v1830_v46 = vmax.f32 %v1798_v0, 0.0 }
 0x32f   : > { %v1833_v47 = vmax.f32 %v1801_v62, 0.0 }
 0x330   : > { %v1831_v51 = vmax.f32 %v1799_v57, 0.0  ;;  %v3071_v53 = vpop.f32.mrb[28].mxu1 }
 0x331   : > { %v1861_v2 = vpack.c.bf16 %v1833_v47, %v1832_v23  ;;  %v3149_v20 = vadd.f32 %v3071_v53, %v2991_v54  ;;  %v1660_v37 = vpop.f32.mrb[29].mxu1 }
 0x332   : > { %v1860_v36 = vpack.c.bf16 %v1831_v51, %v1830_v46  ;;  %v3150_v17 = vadd.f32 %v1660_v37, %v1169_v39  ;;  %v3072_v50 = vpop.f32.mrb[30].mxu1 }
 0x333   : > { %v1804_v32 = vadd.f32 %v3149_v20, %v4568_v63  ;;  %v3151_v9 = vadd.f32 %v3072_v50, %v2992_v49  ;;  %v1663_v29 = vpop.f32.mrb[31].mxu1 }
 0x334   : > { %v1802_v44 = vadd.f32 %v3150_v17, %v4568_v63  ;;  %v3152_v7 = vadd.f32 %v1663_v29, %v1172_v61  ;;  %3105 = vmatprep.mubr.msk.bf16.mxu0 %vm1054_vm2, %v1860_v36 }
 0x335   : > { %v1805_v26 = vadd.f32 %v3151_v9, %v4568_v63  ;;  %3106 = vmatmul.mubr.msk.bf16.gmra.mrb[48].mxu0 %vm1054_vm2, %v1861_v2  ;;  %v1836_v6 = vmax.f32 %v1804_v32, 0.0 }
 0x336   : > { %v1803_v8 = vadd.f32 %v3152_v7, %v4568_v63  ;;  %v1834_v25 = vmax.f32 %v1802_v44, 0.0 }
 0x337   : > { %v1837_v10 = vmax.f32 %v1805_v26, 0.0 }
 0x338   : > { %v1835_v18 = vmax.f32 %v1803_v8, 0.0  ;;  %v3075_v55 = vpop.f32.mrb[0].mxu1 }
 0x339   : > { %v1863_v3 = vpack.c.bf16 %v1837_v10, %v1836_v6  ;;  %v1808_v14 = vadd.f32 %v3075_v55, %v4568_v63  ;;  %v1676_v22 = vpop.f32.mrb[1].mxu1 }
 0x33a   : > { %v1862_v48 = vpack.c.bf16 %v1835_v18, %v1834_v25  ;;  %v1806_v58 = vadd.f32 %v4568_v63, %v1676_v22  ;;  %v3076_v4 = vpop.f32.mrb[2].mxu1 }
 0x33b   : > { %v1809_v54 = vadd.f32 %v3076_v4, %v4568_v63  ;;  %v1679_v39 = vpop.f32.mrb[3].mxu1  ;;  %v1840_v61 = vmax.f32 %v1808_v14, 0.0 }
 0x33c   : > { %v1807_v49 = vadd.f32 %v4568_v63, %v1679_v39  ;;  %3109 = vmatprep.mubr.msk.bf16.mxu0 %vm1054_vm2, %v1862_v48  ;;  %v1838_v1 = vmax.f32 %v1806_v58, 0.0 }
 0x33d   : > { %v1841_v24 = vmax.f32 %v1809_v54, 0.0  ;;  %3110 = vmatmul.mubr.msk.bf16.gmra.mrb[52].mxu0 %vm1054_vm2, %v1863_v3 }
 0x33e   : > { %v1839_v30 = vmax.f32 %v1807_v49, 0.0  ;;  %v4618_v49 = vld [vmem:[#allocation13] ss:$0 sm:$0xff] }
 0x33f   : > { %v1865_v11 = vpack.c.bf16 %v1841_v24, %v1840_v61  ;;  %v3372_v61 = vld [vmem:[%s3992_s16 + $0x8] sm:$0xff]  }
 0x340   : > { %v1864_v28 = vpack.c.bf16 %v1839_v30, %v1838_v1  ;;  %v3079_v40 = vpop.f32.mrb[4].mxu1  ;;  %v2124_v24 = vunpack.c.l.bf16 %v3372_v61  ;;  %v3373_v1 = vld [vmem:[%s3992_s16] sm:$0xff]  }
 0x341   : > { %v1812_v34 = vadd.f32 %v3079_v40, %v4568_v63  ;;  %v1692_v45 = vpop.f32.mrb[5].mxu1  ;;  %v2122_v30 = vunpack.c.l.bf16 %v3373_v1  ;;  %v2125_v40 = vunpack.c.h.bf16 %v3372_v61 }
 0x342   : > { %v1810_v43 = vadd.f32 %v4568_v63, %v1692_v45  ;;  %v3080_v56 = vpop.f32.mrb[6].mxu1  ;;  %3113 = vmatprep.mubr.msk.bf16.mxu0 %vm1054_vm2, %v1864_v28 }
 0x343   : > { %v1813_v60 = vadd.f32 %v3080_v56, %v4568_v63  ;;  %v1695_v33 = vpop.f32.mrb[7].mxu1  ;;  %v1844_v35 = vmax.f32 %v1812_v34, 0.0  ;;  %v2123_v34 = vunpack.c.h.bf16 %v3373_v1 }
 0x344   : > { %v1811_v27 = vadd.f32 %v4568_v63, %v1695_v33  ;;  %v1842_v12 = vmax.f32 %v1810_v43, 0.0 }
 0x345   : > { %v1845_v41 = vmax.f32 %v1813_v60, 0.0  ;;  %3114 = vmatmul.mubr.msk.bf16.gmra.mrb[56].mxu0 %vm1054_vm2, %v1865_v11 }
 0x346   : > { %v1843_v13 = vmax.f32 %v1811_v27, 0.0 }
 0x347   : > { %v1867_v15 = vpack.c.bf16 %v1845_v41, %v1844_v35 }
 0x348   : > { %v1866_v19 = vpack.c.bf16 %v1843_v13, %v1842_v12  ;;  %v3083_v16 = vpop.f32.mrb[8].mxu1 }
 0x349   : > { %v1816_v21 = vadd.f32 %v3083_v16, %v4568_v63  ;;  %v1708_v59 = vpop.f32.mrb[9].mxu1 }
 0x34a   : > { %v1814_v31 = vadd.f32 %v4568_v63, %v1708_v59  ;;  %v3084_v42 = vpop.f32.mrb[10].mxu1  ;;  %3117 = vmatprep.mubr.msk.bf16.mxu0 %vm1054_vm2, %v1866_v19  ;;  %v3374_v19 = vld [vmem:[%s3992_s16 + $0x18] sm:$0xff]  }
 0x34b   : > { %v1817_v52 = vadd.f32 %v3084_v42, %v4568_v63  ;;  %v1711_v38 = vpop.f32.mrb[11].mxu1  ;;  %v1848_v5 = vmax.f32 %v1816_v21, 0.0  ;;  %v2128_v16 = vunpack.c.l.bf16 %v3374_v19  ;;  %v3375_v42 = vld [vmem:[%s3992_s16 + $0x10] sm:$0xff]  }
 0x34c   : > { %v1815_v0 = vadd.f32 %v4568_v63, %v1711_v38  ;;  %v1846_v57 = vmax.f32 %v1814_v31, 0.0 }
 0x34d   : > { %v1849_v62 = vmax.f32 %v1817_v52, 0.0  ;;  %3118 = vmatmul.mubr.msk.bf16.gmra.mrb[60].mxu0 %vm1054_vm2, %v1867_v15  ;;  %v2126_v52 = vunpack.c.l.bf16 %v3375_v42 }
 0x34e   : > { %v1847_v23 = vmax.f32 %v1815_v0, 0.0 }
 0x34f   : > { %v1869_v47 = vpack.c.bf16 %v1849_v62, %v1848_v5  ;;  %v2129_v62 = vunpack.c.h.bf16 %v3374_v19 }
 0x350   : > { %v1868_v46 = vpack.c.bf16 %v1847_v23, %v1846_v57  ;;  %v3087_v51 = vpop.f32.mrb[12].mxu1 }
 0x351   : > { %v1820_v53 = vadd.f32 %v3087_v51, %v4568_v63  ;;  %v1724_v2 = vpop.f32.mrb[13].mxu1 }
 0x352   : > { %v1818_v20 = vadd.f32 %v4568_v63, %v1724_v2  ;;  %v3088_v37 = vpop.f32.mrb[14].mxu1  ;;  %3121 = vmatprep.mubr.msk.bf16.mxu0 %vm1054_vm2, %v1868_v46  ;;  %v2127_v46 = vunpack.c.h.bf16 %v3375_v42 }
 0x353   : > { %v1821_v36 = vadd.f32 %v3088_v37, %v4568_v63  ;;  %v1727_v17 = vpop.f32.mrb[15].mxu1  ;;  %v1852_v32 = vmax.f32 %v1820_v53, 0.0 }
 0x354   : > { %v1819_v50 = vadd.f32 %v4568_v63, %v1727_v17  ;;  %v1850_v29 = vmax.f32 %v1818_v20, 0.0 }
 0x355   : > { %v1853_v9 = vmax.f32 %v1821_v36, 0.0  ;;  %3122 = vmatmul.mubr.msk.bf16.gmra.mrb[64].mxu0 %vm1054_vm2, %v1869_v47 }
 0x356   : > { %v1851_v44 = vmax.f32 %v1819_v50, 0.0 }
 0x357   : > { %v1871_v7 = vpack.c.bf16 %v1853_v9, %v1852_v32  ;;  %v3376_v9 = vld [vmem:[%s3992_s16 + $0x28] sm:$0xff]  }
 0x358   : > { %v1870_v26 = vpack.c.bf16 %v1851_v44, %v1850_v29  ;;  %v3091_v8 = vpop.f32.mrb[16].mxu1  ;;  %v2132_v29 = vunpack.c.l.bf16 %v3376_v9 }
 0x359   : > { %v1824_v6 = vadd.f32 %v3091_v8, %v4568_v63  ;;  %v1740_v10 = vpop.f32.mrb[17].mxu1  ;;  %v3377_v8 = vld [vmem:[%s3992_s16 + $0x20] sm:$0xff]  }
 0x35a   : > { %v1822_v25 = vadd.f32 %v4568_v63, %v1740_v10  ;;  %v3092_v18 = vpop.f32.mrb[18].mxu1  ;;  %3125 = vmatprep.mubr.msk.bf16.mxu0 %vm1054_vm2, %v1870_v26 }
 0x35b   : > { %v1825_v55 = vadd.f32 %v3092_v18, %v4568_v63  ;;  %v1743_v3 = vpop.f32.mrb[19].mxu1  ;;  %v1856_v22 = vmax.f32 %v1824_v6, 0.0  ;;  %v2130_v6 = vunpack.c.l.bf16 %v3377_v8 }
 0x35c   : > { %v1823_v14 = vadd.f32 %v4568_v63, %v1743_v3  ;;  %v1854_v58 = vmax.f32 %v1822_v25, 0.0 }
 0x35d   : > { %v1857_v48 = vmax.f32 %v1825_v55, 0.0  ;;  %3126 = vmatmul.mubr.msk.bf16.gmra.mrb[68].mxu0 %vm1054_vm2, %v1871_v7  ;;  %v2133_v55 = vunpack.c.h.bf16 %v3376_v9 }
 0x35e   : > { %v1855_v4 = vmax.f32 %v1823_v14, 0.0 }
 0x35f   : > { %v1873_v54 = vpack.c.bf16 %v1857_v48, %v1856_v22  ;;  %v2131_v48 = vunpack.c.h.bf16 %v3377_v8 }
 0x360   : > { %v1872_v39 = vpack.c.bf16 %v1855_v4, %v1854_v58 }
 0x362   : > { %3129 = vmatprep.mubr.msk.bf16.mxu0 %vm1054_vm2, %v1872_v39 }
 0x365   : > { %3130 = vmatmul.mubr.msk.bf16.gmra.mrb[72].mxu0 %vm1054_vm2, %v1873_v54 }
 0x400   : > { %v3103_v11 = vpop.f32.mrb[44].mxu0 }
 0x401   : > { %v2004_v63 = vadd.f32 %v3103_v11, %v4618_v49  ;;  %v1995_v28 = vpop.f32.mrb[45].mxu0 }
 0x402   : > { %v1996_v45 = vadd.f32 %v4618_v49, %v1995_v28  ;;  %v3104_v43 = vpop.f32.mrb[46].mxu0 }
 0x403   : > { %v2156_v56 = vadd.f32 %v2124_v24, %v2004_v63  ;;  %v2007_v60 = vadd.f32 %v3104_v43, %v4618_v49  ;;  %v1998_v33 = vpop.f32.mrb[47].mxu0  ;;  %v3378_v63 = vld [vmem:[%s3992_s16 + $0x38] sm:$0xff]   ;;  %v3379_v43 = vld [vmem:[%s3992_s16 + $0x30] sm:$0xff]  }
 0x404   : > { %v2154_v27 = vadd.f32 %v2122_v30, %v1996_v45  ;;  %v1999_v35 = vadd.f32 %v4618_v49, %v1998_v33  ;;  %v2136_v28 = vunpack.c.l.bf16 %v3378_v63 }
 0x405   : > { %v2157_v41 = vadd.f32 %v2125_v40, %v2007_v60  ;;  %v2188_v13 = vmax.f32 %v2156_v56, 0.0  ;;  %v2134_v56 = vunpack.c.l.bf16 %v3379_v43 }
 0x406   : > { %v2155_v12 = vadd.f32 %v2123_v34, %v1999_v35  ;;  %v2186_v21 = vmax.f32 %v2154_v27, 0.0  ;;  %v2137_v35 = vunpack.c.h.bf16 %v3378_v63 }
 0x407   : > { %v2189_v15 = vmax.f32 %v2157_v41, 0.0 }
 0x408   : > { %v2187_v59 = vmax.f32 %v2155_v12, 0.0  ;;  %v3107_v31 = vpop.f32.mrb[48].mxu0 }
 0x409   : > { %v2734_v38 = vpack.c.bf16 %v2189_v15, %v2188_v13  ;;  %v2020_v0 = vadd.f32 %v3107_v31, %v4618_v49  ;;  %v2011_v5 = vpop.f32.mrb[49].mxu0  ;;  %v2135_v15 = vunpack.c.h.bf16 %v3379_v43 }
 0x40a   : > { %v2729_v57 = vpack.c.bf16 %v2187_v59, %v2186_v21  ;;  %v2012_v23 = vadd.f32 %v4618_v49, %v2011_v5  ;;  %v3108_v47 = vpop.f32.mrb[50].mxu0  ;;  %v3380_v5 = vld [vmem:[%s3992_s16 + $0x48] sm:$0xff]  }
 0x40b   : > { %2806 = vst [vmem:[%s4632_s8 + $0x8] sm:$0xff] %v2734_v38   ;;  %v2160_v51 = vadd.f32 %v2128_v16, %v2020_v0  ;;  %v2023_v53 = vadd.f32 %v3108_v47, %v4618_v49  ;;  %v2014_v2 = vpop.f32.mrb[51].mxu0 }
 0x40c   : > { %2730 = vst [vmem:[%s4632_s8] sm:$0xff] %v2729_v57   ;;  %v2158_v20 = vadd.f32 %v2126_v52, %v2012_v23  ;;  %v2015_v37 = vadd.f32 %v4618_v49, %v2014_v2 }
 0x40d   : > { %v2161_v36 = vadd.f32 %v2129_v62, %v2023_v53  ;;  %v2192_v50 = vmax.f32 %v2160_v51, 0.0  ;;  %v2140_v62 = vunpack.c.l.bf16 %v3380_v5 }
 0x40e   : > { %v2159_v17 = vadd.f32 %v2127_v46, %v2015_v37  ;;  %v2190_v44 = vmax.f32 %v2158_v20, 0.0  ;;  %v3381_v46 = vld [vmem:[%s3992_s16 + $0x40] sm:$0xff]   ;;  %v2141_v37 = vunpack.c.h.bf16 %v3380_v5 }
 0x40f   : > { %v2193_v32 = vmax.f32 %v2161_v36, 0.0  ;;  %v2138_v51 = vunpack.c.l.bf16 %v3381_v46 }
 0x410   : > { %v2191_v7 = vmax.f32 %v2159_v17, 0.0  ;;  %v3111_v26 = vpop.f32.mrb[52].mxu0 }
 0x411   : > { %v2744_v10 = vpack.c.bf16 %v2193_v32, %v2192_v50  ;;  %v2036_v25 = vadd.f32 %v3111_v26, %v4618_v49  ;;  %v2027_v18 = vpop.f32.mrb[53].mxu0  ;;  %v2139_v32 = vunpack.c.h.bf16 %v3381_v46 }
 0x412   : > { %v2739_v3 = vpack.c.bf16 %v2191_v7, %v2190_v44  ;;  %v2028_v14 = vadd.f32 %v4618_v49, %v2027_v18  ;;  %v3112_v22 = vpop.f32.mrb[54].mxu0  ;;  %v3382_v18 = vld [vmem:[%s3992_s16 + $0x58] sm:$0xff]  }
 0x413   : > { %2808 = vst [vmem:[%s4632_s8 + $0x18] sm:$0xff] %v2744_v10   ;;  %v2164_v58 = vadd.f32 %v2132_v29, %v2036_v25  ;;  %v2039_v4 = vadd.f32 %v3112_v22, %v4618_v49  ;;  %v2030_v54 = vpop.f32.mrb[55].mxu0 }
 0x414   : > { %2807 = vst [vmem:[%s4632_s8 + $0x10] sm:$0xff] %v2739_v3   ;;  %v2162_v39 = vadd.f32 %v2130_v6, %v2028_v14  ;;  %v2031_v61 = vadd.f32 %v4618_v49, %v2030_v54 }
 0x415   : > { %v2165_v24 = vadd.f32 %v2133_v55, %v2039_v4  ;;  %v2196_v30 = vmax.f32 %v2164_v58, 0.0  ;;  %v2144_v55 = vunpack.c.l.bf16 %v3382_v18 }
 0x416   : > { %v2163_v1 = vadd.f32 %v2131_v48, %v2031_v61  ;;  %v2194_v40 = vmax.f32 %v2162_v39, 0.0  ;;  %v3383_v48 = vld [vmem:[%s3992_s16 + $0x50] sm:$0xff]   ;;  %v2145_v61 = vunpack.c.h.bf16 %v3382_v18 }
 0x417   : > { %v2197_v11 = vmax.f32 %v2165_v24, 0.0  ;;  %v2142_v58 = vunpack.c.l.bf16 %v3383_v48 }
 0x418   : > { %v2195_v34 = vmax.f32 %v2163_v1, 0.0  ;;  %v3115_v45 = vpop.f32.mrb[56].mxu0 }
 0x419   : > { %v2754_v60 = vpack.c.bf16 %v2197_v11, %v2196_v30  ;;  %v2052_v33 = vadd.f32 %v3115_v45, %v4618_v49  ;;  %v2043_v27 = vpop.f32.mrb[57].mxu0  ;;  %v2143_v11 = vunpack.c.h.bf16 %v3383_v48 }
 0x41a   : > { %v2749_v41 = vpack.c.bf16 %v2195_v34, %v2194_v40  ;;  %v2044_v12 = vadd.f32 %v4618_v49, %v2043_v27  ;;  %v3116_v13 = vpop.f32.mrb[58].mxu0  ;;  %v3384_v27 = vld [vmem:[%s3992_s16 + $0x68] sm:$0xff]  }
 0x41b   : > { %2810 = vst [vmem:[%s4632_s8 + $0x28] sm:$0xff] %v2754_v60   ;;  %v2168_v19 = vadd.f32 %v2136_v28, %v2052_v33  ;;  %v2055_v16 = vadd.f32 %v3116_v13, %v4618_v49  ;;  %v2046_v21 = vpop.f32.mrb[59].mxu0 }
 0x41c   : > { %2809 = vst [vmem:[%s4632_s8 + $0x20] sm:$0xff] %v2749_v41   ;;  %v2166_v59 = vadd.f32 %v2134_v56, %v2044_v12  ;;  %v2047_v31 = vadd.f32 %v4618_v49, %v2046_v21 }
 0x41d   : > { %v2169_v42 = vadd.f32 %v2137_v35, %v2055_v16  ;;  %v2200_v38 = vmax.f32 %v2168_v19, 0.0  ;;  %v2148_v35 = vunpack.c.l.bf16 %v3384_v27 }
 0x41e   : > { %v2167_v52 = vadd.f32 %v2135_v15, %v2047_v31  ;;  %v2198_v57 = vmax.f32 %v2166_v59, 0.0  ;;  %v3385_v15 = vld [vmem:[%s3992_s16 + $0x60] sm:$0xff]   ;;  %v2149_v31 = vunpack.c.h.bf16 %v3384_v27 }
 0x41f   : > { %v2201_v0 = vmax.f32 %v2169_v42, 0.0  ;;  %v2146_v19 = vunpack.c.l.bf16 %v3385_v15 }
 0x420   : > { %v2199_v23 = vmax.f32 %v2167_v52, 0.0  ;;  %v3119_v47 = vpop.f32.mrb[60].mxu0 }
 0x421   : > { %v2764_v53 = vpack.c.bf16 %v2201_v0, %v2200_v38  ;;  %v2068_v2 = vadd.f32 %v3119_v47, %v4618_v49  ;;  %v2059_v20 = vpop.f32.mrb[61].mxu0  ;;  %v2147_v0 = vunpack.c.h.bf16 %v3385_v15 }
 0x422   : > { %v2759_v36 = vpack.c.bf16 %v2199_v23, %v2198_v57  ;;  %v2060_v17 = vadd.f32 %v4618_v49, %v2059_v20  ;;  %v3120_v50 = vpop.f32.mrb[62].mxu0  ;;  %v3386_v20 = vld [vmem:[%s3992_s16 + $0x78] sm:$0xff]  }
 0x423   : > { %2812 = vst [vmem:[%s4632_s8 + $0x38] sm:$0xff] %v2764_v53   ;;  %v2172_v9 = vadd.f32 %v2140_v62, %v2068_v2  ;;  %v2071_v29 = vadd.f32 %v3120_v50, %v4618_v49  ;;  %v2062_v44 = vpop.f32.mrb[63].mxu0 }
 0x424   : > { %2811 = vst [vmem:[%s4632_s8 + $0x30] sm:$0xff] %v2759_v36   ;;  %v2170_v7 = vadd.f32 %v2138_v51, %v2060_v17  ;;  %v2063_v26 = vadd.f32 %v4618_v49, %v2062_v44 }
 0x425   : > { %v2173_v8 = vadd.f32 %v2141_v37, %v2071_v29  ;;  %v2204_v10 = vmax.f32 %v2172_v9, 0.0  ;;  %v2152_v37 = vunpack.c.l.bf16 %v3386_v20 }
 0x426   : > { %v2171_v6 = vadd.f32 %v2139_v32, %v2063_v26  ;;  %v2202_v3 = vmax.f32 %v2170_v7, 0.0  ;;  %v3387_v32 = vld [vmem:[%s3992_s16 + $0x70] sm:$0xff]   ;;  %v2153_v26 = vunpack.c.h.bf16 %v3386_v20 }
 0x427   : > { %v2205_v25 = vmax.f32 %v2173_v8, 0.0  ;;  %v2150_v9 = vunpack.c.l.bf16 %v3387_v32 }
 0x428   : > { %v2203_v14 = vmax.f32 %v2171_v6, 0.0  ;;  %v3123_v22 = vpop.f32.mrb[64].mxu0 }
 0x429   : > { %v2774_v4 = vpack.c.bf16 %v2205_v25, %v2204_v10  ;;  %v2084_v54 = vadd.f32 %v3123_v22, %v4618_v49  ;;  %v2075_v39 = vpop.f32.mrb[65].mxu0  ;;  %v2151_v25 = vunpack.c.h.bf16 %v3387_v32 }
 0x42a   : > { %v2769_v24 = vpack.c.bf16 %v2203_v14, %v2202_v3  ;;  %v2076_v1 = vadd.f32 %v4618_v49, %v2075_v39  ;;  %v3124_v30 = vpop.f32.mrb[66].mxu0 }
 0x42b   : > { %2814 = vst [vmem:[%s4632_s8 + $0x48] sm:$0xff] %v2774_v4   ;;  %v2176_v63 = vadd.f32 %v2144_v55, %v2084_v54  ;;  %v2087_v28 = vadd.f32 %v3124_v30, %v4618_v49  ;;  %v2078_v40 = vpop.f32.mrb[67].mxu0 }
 0x42c   : > { %2813 = vst [vmem:[%s4632_s8 + $0x40] sm:$0xff] %v2769_v24   ;;  %v2174_v34 = vadd.f32 %v2142_v58, %v2076_v1  ;;  %v2079_v45 = vadd.f32 %v4618_v49, %v2078_v40 }
 0x42d   : > { %v2177_v43 = vadd.f32 %v2145_v61, %v2087_v28  ;;  %v2208_v60 = vmax.f32 %v2176_v63, 0.0 }
 0x42e   : > { %v2175_v56 = vadd.f32 %v2143_v11, %v2079_v45  ;;  %v2206_v41 = vmax.f32 %v2174_v34, 0.0 }
 0x42f   : > { %v2209_v33 = vmax.f32 %v2177_v43, 0.0 }
 0x430   : > { %v2207_v12 = vmax.f32 %v2175_v56, 0.0  ;;  %v3127_v13 = vpop.f32.mrb[68].mxu0 }
 0x431   : > { %v2784_v16 = vpack.c.bf16 %v2209_v33, %v2208_v60  ;;  %v2100_v21 = vadd.f32 %v3127_v13, %v4618_v49  ;;  %v2091_v59 = vpop.f32.mrb[69].mxu0 }
 0x432   : > { %v2779_v42 = vpack.c.bf16 %v2207_v12, %v2206_v41  ;;  %v2092_v52 = vadd.f32 %v4618_v49, %v2091_v59  ;;  %v3128_v38 = vpop.f32.mrb[70].mxu0 }
 0x433   : > { %2816 = vst [vmem:[%s4632_s8 + $0x58] sm:$0xff] %v2784_v16   ;;  %v2180_v5 = vadd.f32 %v2148_v35, %v2100_v21  ;;  %v2103_v62 = vadd.f32 %v3128_v38, %v4618_v49  ;;  %v2094_v57 = vpop.f32.mrb[71].mxu0 }
 0x434   : > { %2815 = vst [vmem:[%s4632_s8 + $0x50] sm:$0xff] %v2779_v42   ;;  %v2178_v23 = vadd.f32 %v2146_v19, %v2092_v52  ;;  %v2095_v47 = vadd.f32 %v4618_v49, %v2094_v57 }
 0x435   : > { %v2181_v46 = vadd.f32 %v2149_v31, %v2103_v62  ;;  %v2212_v53 = vmax.f32 %v2180_v5, 0.0 }
 0x436   : > { %v2179_v51 = vadd.f32 %v2147_v0, %v2095_v47  ;;  %v2210_v36 = vmax.f32 %v2178_v23, 0.0 }
 0x437   : > { %v2213_v2 = vmax.f32 %v2181_v46, 0.0 }
 0x438   : > { %v2211_v17 = vmax.f32 %v2179_v51, 0.0  ;;  %v3131_v50 = vpop.f32.mrb[72].mxu0 }
 0x439   : > { %v2794_v29 = vpack.c.bf16 %v2213_v2, %v2212_v53  ;;  %v2116_v44 = vadd.f32 %v3131_v50, %v4618_v49  ;;  %v2107_v7 = vpop.f32.mrb[73].mxu0 }
 0x43a   : > { %v2789_v8 = vpack.c.bf16 %v2211_v17, %v2210_v36  ;;  %v2108_v6 = vadd.f32 %v4618_v49, %v2107_v7  ;;  %v3132_v10 = vpop.f32.mrb[74].mxu0 }
 0x43b   : > { %2818 = vst [vmem:[%s4632_s8 + $0x68] sm:$0xff] %v2794_v29   ;;  %v2184_v18 = vadd.f32 %v2152_v37, %v2116_v44  ;;  %v2119_v55 = vadd.f32 %v3132_v10, %v4618_v49  ;;  %v2110_v3 = vpop.f32.mrb[75].mxu0 }
 0x43c   : > { %2817 = vst [vmem:[%s4632_s8 + $0x60] sm:$0xff] %v2789_v8   ;;  %v2182_v14 = vadd.f32 %v2150_v9, %v2108_v6  ;;  %v2111_v22 = vadd.f32 %v4618_v49, %v2110_v3 }
 0x43d   : > { %v2185_v48 = vadd.f32 %v2153_v26, %v2119_v55  ;;  %v2216_v4 = vmax.f32 %v2184_v18, 0.0 }
 0x43e   : > { %v2183_v58 = vadd.f32 %v2151_v25, %v2111_v22  ;;  %v2214_v39 = vmax.f32 %v2182_v14, 0.0 }
 0x43f   : > { %v2217_v54 = vmax.f32 %v2185_v48, 0.0 }
 0x440   : > { %v2215_v61 = vmax.f32 %v2183_v58, 0.0 }
 0x441   : > { %v2804_v24 = vpack.c.bf16 %v2217_v54, %v2216_v4 }
 0x442   : > { %v2799_v49 = vpack.c.bf16 %v2215_v61, %v2214_v39 }
 0x443   : > { %2820 = vst [vmem:[%s4632_s8 + $0x78] sm:$0xff] %v2804_v24  }
 0x444   : > { %2819 = vst [vmem:[%s4632_s8 + $0x70] sm:$0xff] %v2799_v49  }
 0x445   : > { %3599 = shalt.err (!%p3596_p8)
}
 0x446   : > { %s3600_s19 = scalar_lea.hbm %s4691_s9, 2048  ;;  %s3604_s8 = scalar_lea.hbm %s4746_s7, 4096 }
 0x447   : > { %p3601_p4 = scmp.ne.s32.totalorder %s4691_s9, %s3600_s19  ;;  %p3605_p3 = scmp.lt.u32.totalorder %s4691_s9, %s4746_s7 }
 0x448   : > { %p3606_p5 = scmp.lt.u32.totalorder %s3604_s8, %s3600_s19  ;;  %p3608_p6 = scmp.lt.u32.totalorder %s3600_s19, %s4691_s9 }
 0x449   : > { %p3602_p10 = pnand %p3601_p4, %p4843_p9 }
 0x44a   : > { %p3607_p7 = por %p3606_p5, %p3605_p3 }
 0x44b   : > { %p3603_p11 = pneg %p3602_p10 }
 0x44c   : > { %p3609_p12 = por %p3608_p6, %p3607_p7 }
 0x44e   : > { %p3610_p1 = pnand %p3609_p12, %p3603_p11 }
 0x450   : > { %3613 = shalt.err (!%p3610_p1)
}
 0x451   : > { %s3676_s22 = smov 64   ;;  %s3677_s29 = smov 4  }
 0x452   : > { %3231 = dma.vmem_to_hbm [thread:$0]  (%p4843_p9), %s4693_s28, 2048, %s4691_s9, %s2379_s30, %s3676_s22, %s3676_s22, %s3677_s29  }
 0x453 PF: > { %s2408_s15 = sand.u32 1, %s3652_s24   ;;  %p4844_p13 = scmp.ne.s32.totalorder %s4775_s21, 0 }
 0x454   : > { %p4845_p0 = scmp.ge.s32.totalorder %s3664_s27, 2  ;;  %s2409_s13 = scalar_lea.sflag [#allocation4], %s2408_s15 }
 0x456   : > { %p3257_p2 = pnand %p4845_p0, %p4844_p13 }
 0x458   : > { %3647 = dma.done.wait (!%p3257_p2), %s2409_s13, 2048  }
 0x459   : > { %3649 = vsyncadd (!%p3257_p2), %s2409_s13, 4294965248  ;;  %p23_p8 = scmp.ge.s32.totalorder %s3904_s11, 4   ;;  %s4846_s24 = smov %s3656_s25 }
 0x45a   : > { %s4847_s25 = smov %s3660_s26  ;;  %s4848_s26 = smov %s3915_s17 }
 0x45b   : > { %s4849_s27 = smov %s3904_s11  ;;  %25 = sbr.rel (!%p23_p8) target bundleno = 8 (0x8), region = 119 }
 0x462   :  { %2414 = vsyncpa [#allocation3], 1 }
 0x463   :  { %2416 = vsyncpa [#allocation3 + $0x1], 1 }
 0x464   :  { %2417 = vsyncpa [#allocation6], 1 }
 0x465   :  { %2418 = vsyncpa [#allocation9], 1 }
 0x466   :  { %2419 = vsyncpa [#allocation12], 1 }
 0x467   :  { %2420 = vsyncpa [#allocation4], 1 }
 0x468   :  { %2422 = vsyncpa [#allocation4 + $0x1], 1 }

</bundles_post_ra>
